<compile_context>
chip_gen: v7x
topology: tpu7x:2x2x1
jax: 0.10.0
libtpu: 0.0.40
codegen_flags: <defaults>
</compile_context>

<pallas_src>
import jax
import jax.numpy as jnp
from jax import lax
from jax.experimental import pallas as pl
from jax.experimental.pallas import tpu as pltpu


def _round_up(a, m):
    return (a + m - 1) // m * m


def _pick_q_tile(n):
    """Largest query tile that keeps output blocks lane-dense.

    For n <= 512 use a single tile (block = full dim, always legal).  Otherwise pick
    a divisor of n that is a multiple of 128 so the (C, q_tile) output block and the
    (q_tile, N) energy slab satisfy the (8, 128) tiling rule.
    """
    if n <= 512:
        return n
    for qt in (512, 384, 256, 128):
        if n % qt == 0:
            return qt
    return n   # fallback: single tile (large-N odd shapes)


def pam_kernel(x_ref, w_ref, b_ref, gamma_ref, o_ref):
    """One (batch, query-tile) step of PAM.

    x_ref     : (1, C, N)   input, channel-major / spatial-minor (full key row)
    w_ref     : (R, C)      fused projection weights (bf16), VMEM-resident
    b_ref     : (R, 1)      fused projection biases (f32), VMEM-resident
    gamma_ref : (1,)        scalar gamma, SMEM
    o_ref     : (1, C, QT)  output tile (QT = query tile along the spatial dim)
    """
    C, N = x_ref.shape[1], x_ref.shape[2]
    QT = o_ref.shape[2]
    off_c = _round_up(C, 8)        # row holding the (Wk^T bq) weight vector
    off_v = off_c + 8              # first row of the value block

    qi = pl.program_id(1)
    q_start = pl.multiple_of(qi * QT, QT)

    x = x_ref[0]                                   # (C, N) f32 (keys / values source)
    x_bf = x.astype(jnp.bfloat16)

    # Single fused MXU pass over the C-contraction:
    #   rows [0, C)            -> k_tilde = (Wq^T Wk) @ x
    #   row  off_c             -> cbias   = (Wk^T bq)^T x   (j-dependent bias)
    #   rows [off_v, off_v+C)  -> value 1x1 conv (+ bv)
    #   row  off_v + C         -> all-ones (softmax denominators); rest zero pad.
    proj = jnp.dot(w_ref[...], x_bf,
                   preferred_element_type=jnp.float32) + b_ref[...]   # (R, N) f32

    k_tilde = proj[0:C].astype(jnp.bfloat16)       # (C, N)
    cbias = proj[off_c:off_c + 1]                  # (1, N) f32
    v_aug = proj[off_v:].astype(jnp.bfloat16)      # (C + 1 + pad, N)

    # Query slice of x for this tile (f32 kept for the residual add).
    xq = x_ref[0, :, pl.ds(q_start, QT)]           # (C, QT) f32
    xq_bf = xq.astype(jnp.bfloat16)

    # energy[i, j] = x_{q_start+i} . k_tilde_j + cbias_j, contraction over C on the
    # MXU with a transposed LHS (no explicit transpose / XLU pass).
    energy = lax.dot_general(
        xq_bf, k_tilde,
        dimension_numbers=(((0,), (0,)), ((), ())),
        preferred_element_type=jnp.float32) + cbias                   # (QT, N) f32

    # Unnormalized softmax numerator, stored ONCE as bf16 (normalization deferred).
    m = jnp.max(energy, axis=-1, keepdims=True)
    p = jnp.exp(energy - m).astype(jnp.bfloat16)                      # (QT, N) bf16

    # out_aug[r, i] = sum_j v_aug[r, j] * p[i, j]; row C of v_aug is all-ones, so
    # out_aug[C, i] is the softmax denominator for query i (consistent with the
    # bf16 numerator used above).  Trailing zero-pad rows are ignored.
    out_aug = lax.dot_general(
        v_aug, p,
        dimension_numbers=(((1,), (1,)), ((), ())),
        preferred_element_type=jnp.float32)                           # (C+1+pad, QT)

    out = out_aug[0:C] * pl.reciprocal(out_aug[C:C + 1], approx=True)  # (C, QT)

    gamma = gamma_ref[0]
    o_ref[0] = (gamma * out + xq).astype(o_ref.dtype)


def _build_fused_params(wq, bq, wk, bk, wv, bv):
    """Fold the three 1x1 convs (plus the softmax-invariant energy rewrite) into one
    (R, C) weight / (R, 1) bias pair.  bk and i-only / constant bias terms shift each
    energy row by a constant, which softmax(dim=-1) ignores, so they drop exactly."""
    del bk
    _, C = wq.shape
    off_c = _round_up(C, 8)
    off_v = off_c + 8
    off_ones = off_v + C
    R = _round_up(off_ones + 1, 8)

    m_mat = wq.T @ wk            # (C, C): the x_i^T M x_j term
    c_vec = wk.T @ bq            # (C,)  : the (Wk^T bq)^T x_j term

    w_all = jnp.zeros((R, C), jnp.float32)
    w_all = w_all.at[0:C].set(m_mat)
    w_all = w_all.at[off_c].set(c_vec)
    w_all = w_all.at[off_v:off_v + C].set(wv)

    b_all = jnp.zeros((R, 1), jnp.float32)
    b_all = b_all.at[off_v:off_v + C, 0].set(bv)
    b_all = b_all.at[off_ones, 0].set(1.0)       # ones row -> row sums of p

    return w_all.astype(jnp.bfloat16), b_all


def pam_forward(x, wq, bq, wk, bk, wv, bv, gamma):
    """x: (B, C, H, W) float32 (NCHW, like PyTorch).  Returns (B, C, H, W)."""
    B, C, H, W = x.shape
    N = H * W
    QT = _pick_q_tile(N)
    NQ = N // QT

    x_cn = x.reshape(B, C, N)                    # reshape only -- no transpose
    w_all, b_all = _build_fused_params(wq, bq, wk, bk, wv, bv)
    R = w_all.shape[0]
    gamma_arr = jnp.asarray(gamma, jnp.float32).reshape(1)

    cost = pl.CostEstimate(
        flops=int(2 * B * N * N * (2 * C + 1) + 2 * B * NQ * R * C * N),
        transcendentals=int(B * N * N),
        bytes_accessed=int(8 * B * C * N + 4 * R * (C + 1)),
    )

    out_cn = pl.pallas_call(
        pam_kernel,
        out_shape=jax.ShapeDtypeStruct((B, C, N), x.dtype),
        grid_spec=pl.GridSpec(
            grid=(B, NQ),
            in_specs=[
                # Full key row; block index depends only on b, so the tile stays
                # VMEM-resident across the inner q-tile axis (no re-DMA).
                pl.BlockSpec((1, C, N), lambda b, q: (b, 0, 0)),
                # Constant index maps keep the fused weights/biases VMEM-resident
                # across the whole grid; only x / out stream per step.
                pl.BlockSpec((R, C), lambda b, q: (0, 0),
                             memory_space=pltpu.MemorySpace.VMEM),
                pl.BlockSpec((R, 1), lambda b, q: (0, 0),
                             memory_space=pltpu.MemorySpace.VMEM),
                pl.BlockSpec(memory_space=pltpu.MemorySpace.SMEM),
            ],
            out_specs=pl.BlockSpec((1, C, QT), lambda b, q: (b, 0, q)),
        ),
        compiler_params=pltpu.CompilerParams(
            # Both axes are independent -> shard across v7x's 2 TensorCores.
            dimension_semantics=("parallel", "parallel"),
            # Above the 16/32 MiB scoped defaults, below v7x's 64 MiB physical.
            vmem_limit_bytes=48 * 1024 * 1024,
        ),
        cost_estimate=cost,
    )(x_cn, w_all, b_all, gamma_arr)

    return out_cn.reshape(B, C, H, W)


def pam_reference(x, wq, bq, wk, bk, wv, bv, gamma):
    """Pure-JAX reference mirroring the PyTorch forward exactly (NCHW, f32)."""
    B, C, H, W = x.shape
    N = H * W
    q = jnp.einsum('bchw,oc->bohw', x, wq) + bq[None, :, None, None]
    k = jnp.einsum('bchw,oc->bohw', x, wk) + bk[None, :, None, None]
    v = jnp.einsum('bchw,oc->bohw', x, wv) + bv[None, :, None, None]
    proj_q = jnp.transpose(q.reshape(B, -1, N), (0, 2, 1))   # (B, N, Cq)
    proj_k = k.reshape(B, -1, N)                             # (B, Cq, N)
    energy = jnp.einsum('bnc,bcm->bnm', proj_q, proj_k)      # (B, N, N)
    attn = jax.nn.softmax(energy, axis=-1)
    proj_v = v.reshape(B, -1, N)                             # (B, C, N)
    out = jnp.einsum('bcn,bmn->bcm', proj_v, attn)           # (B, C, N)
    out = out.reshape(B, C, H, W)
    return gamma * out + x


if __name__ == "__main__":
    # Small shapes consistent with the module (in_dim must be >= 8 so in_dim//8 >= 1).
    B, C, H, W = 2, 32, 16, 16
    Cq = C // 8

    key = jax.random.PRNGKey(0)
    kx, k1, k2, k3, k4, k5, k6 = jax.random.split(key, 7)

    x = jax.random.normal(kx, (B, C, H, W), jnp.float32)

    # Deterministic parameter init (Conv2d kernel_size=1 -> weight (Cout, Cin)).
    scale = 1.0 / (C ** 0.5)
    wq = jax.random.uniform(k1, (Cq, C), jnp.float32, -scale, scale)
    bq = jax.random.uniform(k2, (Cq,), jnp.float32, -scale, scale)
    wk = jax.random.uniform(k3, (Cq, C), jnp.float32, -scale, scale)
    bk = jax.random.uniform(k4, (Cq,), jnp.float32, -scale, scale)
    wv = jax.random.uniform(k5, (C, C), jnp.float32, -scale, scale)
    bv = jax.random.uniform(k6, (C,), jnp.float32, -scale, scale)
    gamma_init = jnp.float32(0.0)   # PAM_Module.__init__ initializes gamma to zero.

    # gamma == 0 (module init): output must equal x exactly (residual path only).
    out0 = jax.block_until_ready(pam_forward(x, wq, bq, wk, bk, wv, bv, gamma_init))
    ref0 = pam_reference(x, wq, bq, wk, bk, wv, bv, gamma_init)
    assert jnp.allclose(out0, ref0, atol=1e-4, rtol=1e-4)

    # Nonzero gamma exercises the attention path.  Tolerances are loosened because
    # the kernel runs the two big matmuls in bf16 (f32 accumulation), folds the
    # projection weights into bf16, and uses the approx EUP reciprocal -- NOT a
    # bit-exact drop-in for the f32 PyTorch module.
    gamma_nz = jnp.float32(0.5)
    out1 = jax.block_until_ready(pam_forward(x, wq, bq, wk, bk, wv, bv, gamma_nz))
    ref1 = pam_reference(x, wq, bq, wk, bk, wv, bv, gamma_nz)
    assert out1.shape == (B, C, H, W)
    assert jnp.allclose(out1, ref1, atol=2e-2, rtol=2e-2)

    print("KERNEL_OK")
</pallas_src>

<mosaic_0001>
module attributes {stable_mosaic.version = 11 : i64} {
  func.func @pam_kernel(%arg0: i32, %arg1: i32, %arg2: memref<1x32x256xf32, #tpu.memory_space<vmem>>, %arg3: memref<80x32xbf16, #tpu.memory_space<vmem>>, %arg4: memref<80x1xf32, #tpu.memory_space<vmem>>, %arg5: memref<1xf32, #tpu.memory_space<smem>>, %arg6: memref<1x32x256xf32, #tpu.memory_space<vmem>>) attributes {dimension_semantics = [#tpu.dimension_semantics<parallel>, #tpu.dimension_semantics<parallel>], iteration_bounds = array<i64: 2, 1>, scalar_prefetch = 0 : i64, scratch_operands = 0 : i64, tpu.core_type = #tpu.core_type<tc>, window_params = [{transform_indices = @transform_0, window_bounds = array<i64: 1, 32, 256>}, {pipeline_mode = #tpu.pipeline_mode<synchronous>, transform_indices = @transform_1, window_bounds = array<i64: 80, 32>}, {pipeline_mode = #tpu.pipeline_mode<synchronous>, transform_indices = @transform_2, window_bounds = array<i64: 80, 1>}, {transform_indices = @transform_3, window_bounds = array<i64: 1>}, {transform_indices = @transform_4, window_bounds = array<i64: 1, 32, 256>}]} {
    %c256_i32 = arith.constant 256 : i32
    %0 = arith.muli %arg1, %c256_i32 : i32
    %1 = tpu.assume_multiple %0, 256 : i32
    %c0 = arith.constant 0 : index
    %c0_0 = arith.constant 0 : index
    %c0_1 = arith.constant 0 : index
    %2 = vector.load %arg2[%c0, %c0_0, %c0_1] : memref<1x32x256xf32, #tpu.memory_space<vmem>>, vector<1x32x256xf32>
    %3 = vector.shape_cast %2 : vector<1x32x256xf32> to vector<32x256xf32>
    %4 = arith.truncf %3 : vector<32x256xf32> to vector<32x256xbf16>
    %c0_2 = arith.constant 0 : index
    %c0_3 = arith.constant 0 : index
    %5 = vector.load %arg3[%c0_2, %c0_3] : memref<80x32xbf16, #tpu.memory_space<vmem>>, vector<80x32xbf16>
    %cst = arith.constant dense<0.000000e+00> : vector<80x256xf32>
    %6 = tpu.matmul %5, %4, %cst {dimension_numbers = #tpu.dot_dimension_numbers<[1], [0], [0], [1], [0, 0, 1, 1], [], []>} : vector<80x32xbf16>, vector<32x256xbf16>, vector<80x256xf32> -> vector<80x256xf32>
    %c0_4 = arith.constant 0 : index
    %c0_5 = arith.constant 0 : index
    %7 = vector.load %arg4[%c0_4, %c0_5] : memref<80x1xf32, #tpu.memory_space<vmem>>, vector<80x1xf32>
    %8 = vector.broadcast %7 : vector<80x1xf32> to vector<80x256xf32>
    %9 = arith.addf %6, %8 : vector<80x256xf32>
    %10 = vector.extract_strided_slice %9 {offsets = [0, 0], sizes = [32, 256], strides = [1, 1]} : vector<80x256xf32> to vector<32x256xf32>
    %11 = arith.truncf %10 : vector<32x256xf32> to vector<32x256xbf16>
    %12 = vector.extract_strided_slice %9 {offsets = [32, 0], sizes = [1, 256], strides = [1, 1]} : vector<80x256xf32> to vector<1x256xf32>
    %13 = vector.extract_strided_slice %9 {offsets = [40, 0], sizes = [40, 256], strides = [1, 1]} : vector<80x256xf32> to vector<40x256xf32>
    %14 = arith.truncf %13 : vector<40x256xf32> to vector<40x256xbf16>
    %c0_6 = arith.constant 0 : index
    %c0_7 = arith.constant 0 : index
    %15 = arith.index_cast %1 : i32 to index
    %16 = vector.load %arg2[%c0_6, %c0_7, %15] : memref<1x32x256xf32, #tpu.memory_space<vmem>>, vector<1x32x256xf32>
    %17 = vector.shape_cast %16 : vector<1x32x256xf32> to vector<32x256xf32>
    %18 = arith.truncf %17 : vector<32x256xf32> to vector<32x256xbf16>
    %cst_8 = arith.constant dense<0.000000e+00> : vector<256x256xf32>
    %19 = tpu.matmul %18, %11, %cst_8 {dimension_numbers = #tpu.dot_dimension_numbers<[0], [0], [1], [1], [0, 1, 1, 1], [], []>} : vector<32x256xbf16>, vector<32x256xbf16>, vector<256x256xf32> -> vector<256x256xf32>
    %20 = vector.broadcast %12 : vector<1x256xf32> to vector<256x256xf32>
    %21 = arith.addf %19, %20 : vector<256x256xf32>
    %cst_9 = arith.constant dense<0xFF800000> : vector<256xf32>
    %22 = vector.multi_reduction <maximumf>, %21, %cst_9 [1] : vector<256x256xf32> to vector<256xf32>
    %23 = vector.shape_cast %22 : vector<256xf32> to vector<256x1xf32>
    %24 = vector.broadcast %23 : vector<256x1xf32> to vector<256x256xf32>
    %25 = arith.subf %21, %24 : vector<256x256xf32>
    %26 = math.exp %25 : vector<256x256xf32>
    %27 = arith.truncf %26 : vector<256x256xf32> to vector<256x256xbf16>
    %cst_10 = arith.constant dense<0.000000e+00> : vector<40x256xf32>
    %28 = tpu.matmul %14, %27, %cst_10 {dimension_numbers = #tpu.dot_dimension_numbers<[1], [1], [0], [0], [0, 0, 1, 0], [], []>} : vector<40x256xbf16>, vector<256x256xbf16>, vector<40x256xf32> -> vector<40x256xf32>
    %29 = vector.extract_strided_slice %28 {offsets = [0, 0], sizes = [32, 256], strides = [1, 1]} : vector<40x256xf32> to vector<32x256xf32>
    %30 = vector.extract_strided_slice %28 {offsets = [32, 0], sizes = [1, 256], strides = [1, 1]} : vector<40x256xf32> to vector<1x256xf32>
    %31 = tpu.reciprocal %30 {approx = true} : vector<1x256xf32> -> vector<1x256xf32>
    %32 = vector.broadcast %31 : vector<1x256xf32> to vector<32x256xf32>
    %33 = arith.mulf %29, %32 : vector<32x256xf32>
    %c0_11 = arith.constant 0 : index
    %34 = memref.load %arg5[%c0_11] : memref<1xf32, #tpu.memory_space<smem>>
    %35 = vector.broadcast %34 : f32 to vector<32x256xf32>
    %36 = arith.mulf %35, %33 : vector<32x256xf32>
    %37 = arith.addf %36, %17 : vector<32x256xf32>
    %c0_12 = arith.constant 0 : index
    %c0_13 = arith.constant 0 : index
    %c0_14 = arith.constant 0 : index
    %38 = vector.load %arg6[%c0_12, %c0_13, %c0_14] : memref<1x32x256xf32, #tpu.memory_space<vmem>>, vector<1x32x256xf32>
    %39 = vector.shape_cast %38 : vector<1x32x256xf32> to vector<32x256xf32>
    %40 = vector.shape_cast %37 : vector<32x256xf32> to vector<1x32x256xf32>
    tpu.vector_store %arg6[%c0_12, %c0_13, %c0_14], %40 {strides = array<i32>} : memref<1x32x256xf32, #tpu.memory_space<vmem>>, vector<1x32x256xf32>,
    return
  }
  func.func @transform_0(%arg0: i32, %arg1: i32) -> (i32, i32, i32) {
    %c0_i32 = arith.constant 0 : i32
    %c0_i32_0 = arith.constant 0 : i32
    %c0_i32_1 = arith.constant 0 : i32
    return %arg0, %c0_i32, %c0_i32_0 : i32, i32, i32
  }
  func.func @transform_1(%arg0: i32, %arg1: i32) -> (i32, i32) {
    %c0_i32 = arith.constant 0 : i32
    %c0_i32_0 = arith.constant 0 : i32
    %c0_i32_1 = arith.constant 0 : i32
    return %c0_i32, %c0_i32_0 : i32, i32
  }
  func.func @transform_2(%arg0: i32, %arg1: i32) -> (i32, i32) {
    %c0_i32 = arith.constant 0 : i32
    %c0_i32_0 = arith.constant 0 : i32
    %c0_i32_1 = arith.constant 0 : i32
    return %c0_i32, %c0_i32_0 : i32, i32
  }
  func.func @transform_3(%arg0: i32, %arg1: i32) -> i32 {
    %c0_i32 = arith.constant 0 : i32
    %c0_i32_0 = arith.constant 0 : i32
    return %c0_i32 : i32
  }
  func.func @transform_4(%arg0: i32, %arg1: i32) -> (i32, i32, i32) {
    %c0_i32 = arith.constant 0 : i32
    %c0_i32_0 = arith.constant 0 : i32
    return %arg0, %c0_i32, %arg1 : i32, i32, i32
  }
}

</mosaic_0001>

<bundles_post_ra>
// kernel: tpu_custom_call.1
= control target key start
LH: loop header
LB: loop body
LE: loop exit
PB: predicated region body
PF: predicated region fallthrough
CT: control target
= control target key end

     0   :  { %s2230_s0 = inlined_call_operand.vmem [shape: f32[2,32,256], index: 0, kind: input, shape index: {}]   ;;  %s2231_s1 = inlined_call_operand.vmem [shape: bf16[80,32], index: 1, kind: input, shape index: {}]   ;;  %s2232_s2 = inlined_call_operand.vmem [shape: f32[80,1], index: 2, kind: input, shape index: {}]   ;;  %s2233_s3 = inlined_call_operand.<no memory space> [shape: f32[1], index: 3, kind: input, shape index: {}]   ;;  %s2234_s4 = inlined_call_operand.hbm [shape: f32[2,32,256], index: 4, kind: output, shape index: {}]  }
   0x1   :  { %9 = sst [smem:[#allocation2]] %s2233_s3 }
   0x2   :  { %10 = vsyncpa [#allocation4], 0 }
   0x3   :  { %12 = vsyncpa [#allocation4 + $0x1], 0  ;;  %s1633_s17 = smov 0   ;;  %s1635_s18 = smov 0  }
   0x4   :  { %s1637_s19 = smov 0   ;;  %s1639_s20 = smov 0  }
   0x5   :  { %s1641_s21 = smov 0   ;;  %s1643_s22 = smov 0  }
   0x6 LB: > { %s1243_s3 = sadd.s32 4294967295, %s1599_s22   ;;  %s1244_s23 = sadd.s32 4294967294, %s1599_s22   ;;  %s1599_s22 = sphi %s1643_s22, %s18_s22   ;;  %s1595_s21 = sphi %s1641_s21, %s2306_s21   ;;  %s1591_s20 = sphi %s1639_s20, %s2305_s20   ;;  %s1587_s19 = sphi %s1637_s19, %s2304_s19   ;;  %s1583_s18 = sphi %s1635_s18, %s2303_s18   ;;  %s1579_s17 = sphi %s1633_s17, %s2302_s17  }
   0x7   : > { %s30_s24 = sadd.s32 1, %s1595_s21  ;;  %s128_s25 = sadd.s32 1, %s1587_s19 }
   0x8   : > { %p32_p0 = scmp.ge.s32.totalorder %s30_s24, 2  ;;  %p138_p1 = scmp.ne.s32.totalorder %s1587_s19, %s1583_s18 }
   0x9   : > { %p139_p2 = scmp.eq.s32.totalorder %s1243_s3, 1  ;;  %p144_p3 = scmp.ne.s32.totalorder %s1583_s18, %s1579_s17 }
   0xa   : > { %s2308_s24 = smov (%p32_p0, %s30_s24), 0  ;;  %p145_p5 = scmp.eq.s32.totalorder %s1244_s23, 1 }
   0xb   : > { %p1673_p4 = por %p139_p2, %p138_p1  ;;  %s123_s27 = ssub.s32 %s1595_s21, %s2308_s24 }
   0xc   : > { %p1247_p6 = scmp.ge.s32.totalorder %s1599_s22, 1  ;;  %p126_p7 = scmp.eq.s32.totalorder %s123_s27, 0 }
   0xd   : > { %p1680_p8 = por %p145_p5, %p144_p3  ;;  %p180_p9 = scmp.lt.s32.totalorder %s1599_s22, 3 }
   0xe   : > { %s1686_s29 = scalar_select %p126_p7, %s1587_s19, %s128_s25  }
   0xf   : > { %p181_p10 = pnand %p1247_p6, %p180_p9 }
  0x11   : > { %184 = sbr.rel (%p181_p10) target bundleno = 1081 (0x439), region = 36 }
  0x18   : > { %p206_p11 = scmp.lt.s32.totalorder %s1591_s20, 1  ;;  %v1601_v0 = vmov 0   ;;  %v236_v1 = vld [vmem:[%s2232_s2] sm:$0xff]  ;;  %v237_v2 = vld [vmem:[%s2232_s2 + $0x8] sm:$0xff]  ;;  %v238_v3 = vld [vmem:[%s2232_s2 + $0x10] sm:$0xff]  ;;  %vm321_vm0 = vcmask 261120  }
  0x19   : > { %369 = vmatprep.mubr.bf16.mxu0 %v1601_v0  ;;  %1374 = vset.pattern.permute.xlu0 %v1601_v0  ;;  %v239_v4 = vld [vmem:[%s2232_s2 + $0x18] sm:$0xff]  ;;  %v1376_v17 = vld [vmem:[%s2231_s1] sm:$0xff]   ;;  %v1377_v18 = vld [vmem:[%s2231_s1 + $0x8] sm:$0xff]   ;;  %s1126_s6 = sld [smem:[#allocation2]]  ;;  %s1283_s9 = sshll.u32 %s1591_s20, 10 }
  0x1a   : > { %s207_s30 = scalar_select %p206_p11, %s1591_s20, 1  ;;  %1375 = vset.pattern.permute.xlu1 %v1601_v0  ;;  %566 = vmatprep.mubr.bf16.mxu1 %v1601_v0  ;;  %v1378_v19 = vld [vmem:[%s2231_s1 + $0x10] sm:$0xff]   ;;  %v240_v20 = vld [vmem:[%s2232_s2 + $0x20] sm:$0xff] }
  0x1b   : > { %248 = vperm.xlu0 %1374, %v236_v1   ;;  %258 = vperm.xlu1 %1375, %v238_v3   ;;  %v1380_v3 = vld [vmem:[%s2231_s1 + $0x20] sm:$0xff]   ;;  %s2166_s13 = scalar_lea.hbm %s2234_s4, %s1283_s9  ;;  %s1602_s3 = smov [#allocation3]  }
  0x1c   : > { %s1282_s7 = sshll.u32 %s207_s30, 6 }
  0x1d   : > { %s1709_s16 = scalar_lea.vmem %s2230_s0, %s1282_s7  ;;  %s203_s7 = sand.u32 1, %s1583_s18  }
  0x1e   : > { %v215_v5 = vld [vmem:[%s1709_s16 + $0x8] sm:$0xff]  ;;  %v217_v6 = vld [vmem:[%s1709_s16 + $0x18] sm:$0xff]  ;;  %v214_v7 = vld [vmem:[%s1709_s16] sm:$0xff]  ;;  %s1248_s8 = sshll.u32 %s203_s7, 6  ;;  %s2184_s14 = scalar_lea.sflag [#allocation4], %s203_s7 }
  0x1f   : > { %v223_v8 = vpack.c.bf16 %v217_v6, %v215_v5  ;;  %v216_v9 = vld [vmem:[%s1709_s16 + $0x10] sm:$0xff]  ;;  %v219_v10 = vld [vmem:[%s1709_s16 + $0x28] sm:$0xff]  ;;  %v221_v11 = vld [vmem:[%s1709_s16 + $0x38] sm:$0xff]  ;;  %253 = vperm.xlu0 %1374, %v237_v2   ;;  %263 = vperm.xlu1 %1375, %v239_v4   ;;  %v446_v4 = vlaneseq  ;;  %s2156_s10 = scalar_lea.vmem [#allocation3], %s1248_s8 }
  0x20   : > { %v222_v12 = vpack.c.bf16 %v216_v9, %v214_v7  ;;  %v225_v13 = vpack.c.bf16 %v221_v11, %v219_v10  ;;  %v218_v14 = vld [vmem:[%s1709_s16 + $0x20] sm:$0xff]  ;;  %v220_v15 = vld [vmem:[%s1709_s16 + $0x30] sm:$0xff]  ;;  %v1379_v2 = vld [vmem:[%s2231_s1 + $0x18] sm:$0xff]   ;;  %s1168_s11 = sshll.u32 %s2156_s10, 4  ;;  %s2168_s11 = int_to_ptr.vmem [resolvable:$true] %s1168_s11 }
  0x21   : > { %337 = vmatprep.subr.bf16.mxu0 %v223_v8  ;;  %v224_v16 = vpack.c.bf16 %v220_v15, %v218_v14  ;;  %v447_v5 = vshrl.u32 %v446_v4, 7  ;;  %s1521_s15 = scalar_lea.vmem %s2168_s11, 1024 }
  0x22   : > { %338 = vmatpush1.bf16.msra.mxu0 %v222_v12  ;;  %p1522_p12 = scmp.ne.s32.totalorder %s2168_s11, %s1521_s15 }
  0x23   : > { %339 = vmatprep.subr.bf16.mxu0 %v225_v13 }
  0x24   : > { %p1523_p13 = pnand %p1522_p12, %p1673_p4 }
  0x26   : > { %340 = vmatpush1.bf16.msra.mxu0 %v224_v16  ;;  %p1524_p0 = pneg %p1523_p13 }
  0x29   : > { %1256 = vmatmul.mubr.msk.bf16.vlgmr.msra.gmra.mrb[0].mxu0 %vm321_vm0, %v1376_v17 }
  0x2a   : > { %379 = vmatprep.mubr.bf16.mxu0 %v1601_v0 }
  0x31   : > { %1257 = vmatmul.mubr.msk.bf16.gmra.mrb[4].mxu0 %vm321_vm0, %v1377_v18 }
  0x32   : > { %389 = vmatprep.mubr.bf16.mxu0 %v1601_v0 }
  0x39   : > { %1258 = vmatmul.mubr.msk.bf16.gmra.mrb[8].mxu0 %vm321_vm0, %v1378_v19 }
  0x3a   : > { %399 = vmatprep.mubr.bf16.mxu0 %v1601_v0 }
  0x3d   : > { %454 = vxpose.xlu0.c.b16.start [1/2] (short) %v222_v12, 128 }
  0x41   : > { %455 = vxpose.xlu0.c.b16.end [2/2] (short) %v224_v16, 128  ;;  %1259 = vmatmul.mubr.msk.bf16.gmra.mrb[12].mxu0 %vm321_vm0, %v1379_v2 }
  0x42   : > { %470 = vxpose.xlu1.c.b16.start [1/2] (short) %v223_v8, 128  ;;  %409 = vmatprep.mubr.bf16.mxu0 %v1601_v0  ;;  %v1781_v8 = vsub.s32 0, %v447_v5 }
  0x44   : > { %2256 = vst [vmem:[#allocation8_spill] sm:$0xff] %v1781_v8 }
  0x46   : > { %471 = vxpose.xlu1.c.b16.end [2/2] (short) %v225_v13, 128 }
  0x49   : > { %1260 = vmatmul.mubr.msk.bf16.gmra.mrb[16].mxu0 %vm321_vm0, %v1380_v3 }
  0x62   : > { %268 = vperm.xlu0 %1374, %v240_v20  }
  0x9a   : > { %v249_v21 = vpop.permute.xlu0 %248  ;;  %v259_v30 = vpop.permute.xlu1 %258 }
  0x9e   : > { %v254_v24 = vpop.permute.xlu0 %253  ;;  %v264_v36 = vpop.permute.xlu1 %263 }
  0xa3   : > { %v462_v47 = vpop.trf.xlu0 }
  0xa7   : > { %v463_v48 = vpop.trf.xlu0 }
  0xa8   : > { %v478_v55 = vpop.trf.xlu1 }
  0xab   : > { %v464_v49 = vpop.trf.xlu0 }
  0xac   : > { %v479_v56 = vpop.trf.xlu1 }
  0xaf   : > { %v465_v50 = vpop.trf.xlu0 }
  0xb0   : > { %v480_v57 = vpop.trf.xlu1 }
  0xb3   : > { %v466_v51 = vpop.trf.xlu0 }
  0xb4   : > { %v481_v58 = vpop.trf.xlu1 }
  0xb7   : > { %v467_v52 = vpop.trf.xlu0 }
  0xb8   : > { %v482_v59 = vpop.trf.xlu1 }
  0xbb   : > { %v468_v53 = vpop.trf.xlu0 }
  0xbc   : > { %v483_v60 = vpop.trf.xlu1 }
  0xbf   : > { %v469_v54 = vpop.trf.xlu0 }
  0xc0   : > { %v484_v61 = vpop.trf.xlu1 }
  0xc4   : > { %v485_v62 = vpop.trf.xlu1 }
  0xe1   : > { %v269_v6 = vpop.permute.xlu0 %268 }
  0xfc   : > { %v371_v22 = vpop.f32.mrb[0].mxu0 }
  0xfd   : > { %v373_v23 = vpop.f32.mrb[1].mxu0  ;;  %v372_v26 = vadd.f32 %v371_v22, %v249_v21 }
  0xfe   : > { %v375_v25 = vpop.f32.mrb[2].mxu0  ;;  %v374_v29 = vadd.f32 %v373_v23, %v249_v21 }
  0xff   : > { %v376_v27 = vadd.f32 %v375_v25, %v254_v24  ;;  %v377_v28 = vpop.f32.mrb[3].mxu0 }
 0x100   : > { %v378_v31 = vadd.f32 %v377_v28, %v254_v24 }
 0x101   : > { %v420_v32 = vpack.c.bf16 %v376_v27, %v372_v26 }
 0x102   : > { %v421_v33 = vpack.c.bf16 %v378_v31, %v374_v29 }
 0x104   : > { %v381_v34 = vpop.f32.mrb[4].mxu0  ;;  %534 = vmatprep.subr.bf16.mxu1 %v421_v33 }
 0x105   : > { %v383_v35 = vpop.f32.mrb[5].mxu0  ;;  %535 = vmatpush1.bf16.msra.mxu1 %v420_v32  ;;  %v382_v38 = vadd.f32 %v381_v34, %v259_v30 }
 0x106   : > { %v385_v37 = vpop.f32.mrb[6].mxu0  ;;  %v384_v41 = vadd.f32 %v383_v35, %v259_v30 }
 0x107   : > { %v386_v39 = vadd.f32 %v385_v37, %v264_v36  ;;  %v387_v40 = vpop.f32.mrb[7].mxu0 }
 0x108   : > { %v388_v42 = vadd.f32 %v387_v40, %v264_v36 }
 0x109   : > { %v422_v43 = vpack.c.bf16 %v386_v39, %v382_v38 }
 0x10a   : > { %v423_v44 = vpack.c.bf16 %v388_v42, %v384_v41 }
 0x10c   : > { %v391_v45 = vpop.f32.mrb[8].mxu0  ;;  %536 = vmatprep.subr.bf16.mxu1 %v423_v44 }
 0x10d   : > { %v393_v46 = vpop.f32.mrb[9].mxu0  ;;  %537 = vmatpush1.bf16.msra.mxu1 %v422_v43  ;;  %v392_v7 = vadd.f32 %v391_v45, %v269_v6 }
 0x10e   : > { %v1768_v63 = vpop.f32.mrb[10].mxu0  ;;  %v394_v9 = vadd.f32 %v393_v46, %v269_v6 }
 0x10f   : > { %2254 = vst [vmem:[#allocation6_spill] sm:$0xff] %v1768_v63  ;;  %v1770_v1 = vpop.f32.mrb[11].mxu0  ;;  %v1784_v10 = vrot.slane %v392_v7, %v1781_v8 }
 0x110   : > { %1261 = vmatmul.mubr.msk.bf16.vlgmr.msra.gmra.mrb[0].mxu1 %vm321_vm0, %v462_v47  ;;  %2255 = vst [vmem:[#allocation7_spill] sm:$0xff] %v1770_v1  ;;  %v1787_v11 = vrot.slane %v394_v9, %v1781_v8 }
 0x111   : > { %576 = vmatprep.mubr.bf16.mxu1 %v1601_v0 }
 0x118   : > { %1262 = vmatmul.mubr.msk.bf16.gmra.mrb[4].mxu1 %vm321_vm0, %v463_v48 }
 0x119   : > { %586 = vmatprep.mubr.bf16.mxu1 %v1601_v0 }
 0x120   : > { %1263 = vmatmul.mubr.msk.bf16.gmra.mrb[8].mxu1 %vm321_vm0, %v464_v49 }
 0x121   : > { %596 = vmatprep.mubr.bf16.mxu1 %v1601_v0 }
 0x128   : > { %1264 = vmatmul.mubr.msk.bf16.gmra.mrb[12].mxu1 %vm321_vm0, %v465_v50 }
 0x129   : > { %606 = vmatprep.mubr.bf16.mxu1 %v1601_v0 }
 0x130   : > { %1265 = vmatmul.mubr.msk.bf16.gmra.mrb[16].mxu1 %vm321_vm0, %v466_v51 }
 0x131   : > { %616 = vmatprep.mubr.bf16.mxu1 %v1601_v0 }
 0x138   : > { %1266 = vmatmul.mubr.msk.bf16.gmra.mrb[20].mxu1 %vm321_vm0, %v467_v52 }
 0x139   : > { %626 = vmatprep.mubr.bf16.mxu1 %v1601_v0 }
 0x140   : > { %1267 = vmatmul.mubr.msk.bf16.gmra.mrb[24].mxu1 %vm321_vm0, %v468_v53 }
 0x141   : > { %636 = vmatprep.mubr.bf16.mxu1 %v1601_v0 }
 0x148   : > { %1268 = vmatmul.mubr.msk.bf16.gmra.mrb[28].mxu1 %vm321_vm0, %v469_v54 }
 0x149   : > { %646 = vmatprep.mubr.bf16.mxu1 %v1601_v0 }
 0x150   : > { %1269 = vmatmul.mubr.msk.bf16.gmra.mrb[32].mxu1 %vm321_vm0, %v478_v55 }
 0x151   : > { %656 = vmatprep.mubr.bf16.mxu1 %v1601_v0 }
 0x158   : > { %1270 = vmatmul.mubr.msk.bf16.gmra.mrb[36].mxu1 %vm321_vm0, %v479_v56 }
 0x159   : > { %666 = vmatprep.mubr.bf16.mxu1 %v1601_v0 }
 0x160   : > { %1271 = vmatmul.mubr.msk.bf16.gmra.mrb[40].mxu1 %vm321_vm0, %v480_v57 }
 0x161   : > { %676 = vmatprep.mubr.bf16.mxu1 %v1601_v0 }
 0x168   : > { %1272 = vmatmul.mubr.msk.bf16.gmra.mrb[44].mxu1 %vm321_vm0, %v481_v58 }
 0x169   : > { %686 = vmatprep.mubr.bf16.mxu1 %v1601_v0 }
 0x170   : > { %1273 = vmatmul.mubr.msk.bf16.gmra.mrb[48].mxu1 %vm321_vm0, %v482_v59 }
 0x171   : > { %696 = vmatprep.mubr.bf16.mxu1 %v1601_v0 }
 0x178   : > { %1274 = vmatmul.mubr.msk.bf16.gmra.mrb[52].mxu1 %vm321_vm0, %v483_v60 }
 0x179   : > { %706 = vmatprep.mubr.bf16.mxu1 %v1601_v0 }
 0x180   : > { %1275 = vmatmul.mubr.msk.bf16.gmra.mrb[56].mxu1 %vm321_vm0, %v484_v61 }
 0x181   : > { %716 = vmatprep.mubr.bf16.mxu1 %v1601_v0 }
 0x188   : > { %1276 = vmatmul.mubr.msk.bf16.gmra.mrb[60].mxu1 %vm321_vm0, %v485_v62 }
 0x1e3   : > { %v568_v0 = vpop.f32.mrb[0].mxu1 }
 0x1e4   : > { %v1790_v12 = vadd.f32 %v568_v0, %v1784_v10  ;;  %v570_v13 = vpop.f32.mrb[1].mxu1 }
 0x1e5   : > { %v1793_v14 = vadd.f32 %v570_v13, %v1787_v11  ;;  %v572_v15 = vpop.f32.mrb[2].mxu1 }
 0x1e6   : > { %v1796_v16 = vadd.f32 %v572_v15, %v1784_v10  ;;  %v574_v17 = vpop.f32.mrb[3].mxu1 }
 0x1e7   : > { %v1799_v18 = vadd.f32 %v574_v17, %v1787_v11  ;;  %v727_v19 = vmax.f32 %v1790_v12, %v1793_v14 }
 0x1e9   : > { %728 = vmax.xlane.f32.xlu1 %v727_v19  ;;  %v730_v20 = vmax.f32 %v1796_v16, %v1799_v18 }
 0x1eb   : > { %v578_v21 = vpop.f32.mrb[4].mxu1  ;;  %731 = vmax.xlane.f32.xlu0 %v730_v20 }
 0x1ec   : > { %v1806_v22 = vadd.f32 %v578_v21, %v1784_v10  ;;  %v580_v23 = vpop.f32.mrb[5].mxu1 }
 0x1ed   : > { %v1809_v24 = vadd.f32 %v580_v23, %v1787_v11  ;;  %v582_v25 = vpop.f32.mrb[6].mxu1 }
 0x1ee   : > { %v584_v26 = vpop.f32.mrb[7].mxu1  ;;  %v1812_v27 = vadd.f32 %v582_v25, %v1784_v10 }
 0x1ef   : > { %v1815_v28 = vadd.f32 %v584_v26, %v1787_v11  ;;  %v733_v29 = vmax.f32 %v1806_v22, %v1809_v24 }
 0x1f1   : > { %734 = vmax.xlane.f32.xlu1 %v733_v29  ;;  %v736_v31 = vmax.f32 %v1812_v27, %v1815_v28 }
 0x1f3   : > { %v588_v30 = vpop.f32.mrb[8].mxu1 }
 0x1f4   : > { %v1822_v32 = vadd.f32 %v588_v30, %v1784_v10  ;;  %v590_v33 = vpop.f32.mrb[9].mxu1 }
 0x1f5   : > { %v1825_v34 = vadd.f32 %v590_v33, %v1787_v11  ;;  %v592_v35 = vpop.f32.mrb[10].mxu1  ;;  %737 = vmax.xlane.f32.xlu1 %v736_v31 }
 0x1f6   : > { %v594_v36 = vpop.f32.mrb[11].mxu1  ;;  %v1828_v37 = vadd.f32 %v592_v35, %v1784_v10 }
 0x1f7   : > { %v1831_v38 = vadd.f32 %v594_v36, %v1787_v11  ;;  %v739_v39 = vmax.f32 %v1822_v32, %v1825_v34 }
 0x1f9   : > { %740 = vmax.xlane.f32.xlu1 %v739_v39  ;;  %v742_v41 = vmax.f32 %v1828_v37, %v1831_v38 }
 0x1fb   : > { %v598_v40 = vpop.f32.mrb[12].mxu1 }
 0x1fc   : > { %v1838_v42 = vadd.f32 %v598_v40, %v1784_v10  ;;  %v600_v43 = vpop.f32.mrb[13].mxu1 }
 0x1fd   : > { %v1841_v44 = vadd.f32 %v600_v43, %v1787_v11  ;;  %v602_v45 = vpop.f32.mrb[14].mxu1  ;;  %743 = vmax.xlane.f32.xlu1 %v742_v41 }
 0x1fe   : > { %v604_v46 = vpop.f32.mrb[15].mxu1  ;;  %v1844_v47 = vadd.f32 %v602_v45, %v1784_v10 }
 0x1ff   : > { %v1847_v48 = vadd.f32 %v604_v46, %v1787_v11  ;;  %v745_v49 = vmax.f32 %v1838_v42, %v1841_v44 }
 0x201   : > { %746 = vmax.xlane.f32.xlu1 %v745_v49  ;;  %v748_v51 = vmax.f32 %v1844_v47, %v1847_v48 }
 0x203   : > { %v608_v50 = vpop.f32.mrb[16].mxu1 }
 0x204   : > { %v1854_v52 = vadd.f32 %v608_v50, %v1784_v10  ;;  %v610_v53 = vpop.f32.mrb[17].mxu1 }
 0x205   : > { %v1857_v54 = vadd.f32 %v610_v53, %v1787_v11  ;;  %v612_v55 = vpop.f32.mrb[18].mxu1  ;;  %749 = vmax.xlane.f32.xlu1 %v748_v51 }
 0x206   : > { %v1860_v56 = vadd.f32 %v612_v55, %v1784_v10  ;;  %v614_v57 = vpop.f32.mrb[19].mxu1 }
 0x207   : > { %v1863_v58 = vadd.f32 %v614_v57, %v1787_v11  ;;  %v751_v59 = vmax.f32 %v1854_v52, %v1857_v54 }
 0x209   : > { %752 = vmax.xlane.f32.xlu0 %v751_v59  ;;  %v754_v60 = vmax.f32 %v1860_v56, %v1863_v58 }
 0x20b   : > { %v618_v61 = vpop.f32.mrb[20].mxu1  ;;  %755 = vmax.xlane.f32.xlu1 %v754_v60 }
 0x20c   : > { %v1870_v62 = vadd.f32 %v618_v61, %v1784_v10  ;;  %v620_v2 = vpop.f32.mrb[21].mxu1 }
 0x20d   : > { %v1873_v3 = vadd.f32 %v620_v2, %v1787_v11  ;;  %v622_v4 = vpop.f32.mrb[22].mxu1 }
 0x20e   : > { %v1876_v5 = vadd.f32 %v622_v4, %v1784_v10  ;;  %v624_v6 = vpop.f32.mrb[23].mxu1 }
 0x20f   : > { %v1879_v7 = vadd.f32 %v624_v6, %v1787_v11  ;;  %v757_v9 = vmax.f32 %v1870_v62, %v1873_v3 }
 0x211   : > { %758 = vmax.xlane.f32.xlu0 %v757_v9  ;;  %v760_v0 = vmax.f32 %v1876_v5, %v1879_v7 }
 0x213   : > { %v628_v13 = vpop.f32.mrb[24].mxu1  ;;  %761 = vmax.xlane.f32.xlu1 %v760_v0 }
 0x214   : > { %v1886_v15 = vadd.f32 %v628_v13, %v1784_v10  ;;  %v630_v17 = vpop.f32.mrb[25].mxu1 }
 0x215   : > { %v1889_v19 = vadd.f32 %v630_v17, %v1787_v11  ;;  %v632_v20 = vpop.f32.mrb[26].mxu1 }
 0x216   : > { %v1892_v21 = vadd.f32 %v632_v20, %v1784_v10  ;;  %v634_v23 = vpop.f32.mrb[27].mxu1 }
 0x217   : > { %v1895_v25 = vadd.f32 %v634_v23, %v1787_v11  ;;  %v763_v26 = vmax.f32 %v1886_v15, %v1889_v19 }
 0x219   : > { %764 = vmax.xlane.f32.xlu0 %v763_v26  ;;  %v766_v29 = vmax.f32 %v1892_v21, %v1895_v25 }
 0x21b   : > { %v638_v30 = vpop.f32.mrb[28].mxu1  ;;  %767 = vmax.xlane.f32.xlu1 %v766_v29 }
 0x21c   : > { %v1902_v31 = vadd.f32 %v638_v30, %v1784_v10  ;;  %v640_v33 = vpop.f32.mrb[29].mxu1 }
 0x21d   : > { %v1905_v35 = vadd.f32 %v640_v33, %v1787_v11  ;;  %v642_v36 = vpop.f32.mrb[30].mxu1 }
 0x21e   : > { %v1908_v39 = vadd.f32 %v642_v36, %v1784_v10  ;;  %v644_v40 = vpop.f32.mrb[31].mxu1 }
 0x21f   : > { %v1911_v41 = vadd.f32 %v644_v40, %v1787_v11  ;;  %v769_v43 = vmax.f32 %v1902_v31, %v1905_v35 }
 0x221   : > { %770 = vmax.xlane.f32.xlu0 %v769_v43  ;;  %v772_v45 = vmax.f32 %v1908_v39, %v1911_v41 }
 0x223   : > { %v648_v46 = vpop.f32.mrb[32].mxu1  ;;  %773 = vmax.xlane.f32.xlu1 %v772_v45 }
 0x224   : > { %v1918_v49 = vadd.f32 %v648_v46, %v1784_v10  ;;  %v650_v50 = vpop.f32.mrb[33].mxu1 }
 0x225   : > { %v1921_v51 = vadd.f32 %v650_v50, %v1787_v11  ;;  %v652_v53 = vpop.f32.mrb[34].mxu1 }
 0x226   : > { %v1924_v55 = vadd.f32 %v652_v53, %v1784_v10  ;;  %v654_v57 = vpop.f32.mrb[35].mxu1 }
 0x227   : > { %v1927_v59 = vadd.f32 %v654_v57, %v1787_v11  ;;  %v775_v60 = vmax.f32 %v1918_v49, %v1921_v51 }
 0x229   : > { %776 = vmax.xlane.f32.xlu0 %v775_v60  ;;  %v778_v61 = vmax.f32 %v1924_v55, %v1927_v59 }
 0x22b   : > { %v658_v2 = vpop.f32.mrb[36].mxu1  ;;  %779 = vmax.xlane.f32.xlu1 %v778_v61 }
 0x22c   : > { %v1934_v4 = vadd.f32 %v658_v2, %v1784_v10  ;;  %v660_v6 = vpop.f32.mrb[37].mxu1 }
 0x22d   : > { %v1937_v9 = vadd.f32 %v660_v6, %v1787_v11  ;;  %v662_v0 = vpop.f32.mrb[38].mxu1 }
 0x22e   : > { %v1940_v13 = vadd.f32 %v662_v0, %v1784_v10  ;;  %v664_v17 = vpop.f32.mrb[39].mxu1 }
 0x22f   : > { %v1943_v20 = vadd.f32 %v664_v17, %v1787_v11  ;;  %v781_v23 = vmax.f32 %v1934_v4, %v1937_v9 }
 0x231   : > { %782 = vmax.xlane.f32.xlu0 %v781_v23  ;;  %v784_v26 = vmax.f32 %v1940_v13, %v1943_v20 }
 0x233   : > { %v668_v29 = vpop.f32.mrb[40].mxu1  ;;  %785 = vmax.xlane.f32.xlu1 %v784_v26 }
 0x234   : > { %v1950_v30 = vadd.f32 %v668_v29, %v1784_v10  ;;  %v670_v33 = vpop.f32.mrb[41].mxu1 }
 0x235   : > { %v1953_v36 = vadd.f32 %v670_v33, %v1787_v11  ;;  %v672_v40 = vpop.f32.mrb[42].mxu1 }
 0x236   : > { %v1956_v43 = vadd.f32 %v672_v40, %v1784_v10  ;;  %v674_v45 = vpop.f32.mrb[43].mxu1 }
 0x237   : > { %v1959_v46 = vadd.f32 %v674_v45, %v1787_v11  ;;  %v787_v50 = vmax.f32 %v1950_v30, %v1953_v36 }
 0x239   : > { %788 = vmax.xlane.f32.xlu0 %v787_v50  ;;  %v790_v53 = vmax.f32 %v1956_v43, %v1959_v46 }
 0x23b   : > { %v678_v57 = vpop.f32.mrb[44].mxu1  ;;  %791 = vmax.xlane.f32.xlu1 %v790_v53 }
 0x23c   : > { %v1966_v60 = vadd.f32 %v678_v57, %v1784_v10  ;;  %v680_v61 = vpop.f32.mrb[45].mxu1 }
 0x23d   : > { %v1969_v2 = vadd.f32 %v680_v61, %v1787_v11  ;;  %v682_v6 = vpop.f32.mrb[46].mxu1 }
 0x23e   : > { %v1972_v0 = vadd.f32 %v682_v6, %v1784_v10  ;;  %v684_v17 = vpop.f32.mrb[47].mxu1 }
 0x23f   : > { %v1975_v23 = vadd.f32 %v684_v17, %v1787_v11  ;;  %v793_v26 = vmax.f32 %v1966_v60, %v1969_v2 }
 0x241   : > { %2257 = vst [vmem:[#allocation9_spill] sm:$0xff] %v1975_v23  ;;  %794 = vmax.xlane.f32.xlu0 %v793_v26  ;;  %v796_v29 = vmax.f32 %v1972_v0, %v1975_v23 }
 0x243   : > { %v688_v33 = vpop.f32.mrb[48].mxu1  ;;  %797 = vmax.xlane.f32.xlu1 %v796_v29 }
 0x244   : > { %v1982_v40 = vadd.f32 %v688_v33, %v1784_v10  ;;  %v690_v45 = vpop.f32.mrb[49].mxu1 }
 0x245   : > { %v1985_v50 = vadd.f32 %v690_v45, %v1787_v11  ;;  %v692_v53 = vpop.f32.mrb[50].mxu1 }
 0x246   : > { %2258 = vst [vmem:[#allocation10_spill] sm:$0xff] %v1982_v40  ;;  %v1988_v57 = vadd.f32 %v692_v53, %v1784_v10  ;;  %v694_v61 = vpop.f32.mrb[51].mxu1 }
 0x247   : > { %2259 = vst [vmem:[#allocation11_spill] sm:$0xff] %v1985_v50  ;;  %v1991_v6 = vadd.f32 %v694_v61, %v1787_v11  ;;  %v799_v17 = vmax.f32 %v1982_v40, %v1985_v50 }
 0x248   : > { %2260 = vst [vmem:[#allocation12_spill] sm:$0xff] %v1988_v57 }
 0x249   : > { %2261 = vst [vmem:[#allocation13_spill] sm:$0xff] %v1991_v6  ;;  %800 = vmax.xlane.f32.xlu0 %v799_v17  ;;  %v802_v26 = vmax.f32 %v1988_v57, %v1991_v6 }
 0x24b   : > { %v698_v29 = vpop.f32.mrb[52].mxu1  ;;  %803 = vmax.xlane.f32.xlu1 %v802_v26 }
 0x24c   : > { %v1998_v33 = vadd.f32 %v698_v29, %v1784_v10  ;;  %v700_v45 = vpop.f32.mrb[53].mxu1 }
 0x24d   : > { %v2001_v53 = vadd.f32 %v700_v45, %v1787_v11  ;;  %v702_v8 = vpop.f32.mrb[54].mxu1 }
 0x24e   : > { %2262 = vst [vmem:[#allocation14_spill] sm:$0xff] %v1998_v33  ;;  %v2004_v61 = vadd.f32 %v702_v8, %v1784_v10  ;;  %v704_v1 = vpop.f32.mrb[55].mxu1 }
 0x24f   : > { %2263 = vst [vmem:[#allocation15_spill] sm:$0xff] %v2001_v53  ;;  %v2007_v63 = vadd.f32 %v704_v1, %v1787_v11  ;;  %v805_v17 = vmax.f32 %v1998_v33, %v2001_v53 }
 0x250   : > { %2264 = vst [vmem:[#allocation16_spill] sm:$0xff] %v2004_v61 }
 0x251   : > { %2265 = vst [vmem:[#allocation17_spill] sm:$0xff] %v2007_v63  ;;  %806 = vmax.xlane.f32.xlu0 %v805_v17  ;;  %v808_v26 = vmax.f32 %v2004_v61, %v2007_v63 }
 0x253   : > { %v708_v29 = vpop.f32.mrb[56].mxu1  ;;  %809 = vmax.xlane.f32.xlu1 %v808_v26 }
 0x254   : > { %v2014_v45 = vadd.f32 %v708_v29, %v1784_v10  ;;  %v710_v6 = vpop.f32.mrb[57].mxu1 }
 0x255   : > { %v2017_v8 = vadd.f32 %v710_v6, %v1787_v11  ;;  %v712_v57 = vpop.f32.mrb[58].mxu1 }
 0x256   : > { %2266 = vst [vmem:[#allocation18_spill] sm:$0xff] %v2014_v45  ;;  %v2020_v1 = vadd.f32 %v712_v57, %v1784_v10  ;;  %v714_v40 = vpop.f32.mrb[59].mxu1 }
 0x257   : > { %2267 = vst [vmem:[#allocation19_spill] sm:$0xff] %v2017_v8  ;;  %v2023_v33 = vadd.f32 %v714_v40, %v1787_v11  ;;  %v811_v17 = vmax.f32 %v2014_v45, %v2017_v8 }
 0x258   : > { %2268 = vst [vmem:[#allocation20_spill] sm:$0xff] %v2020_v1 }
 0x259   : > { %2269 = vst [vmem:[#allocation21_spill] sm:$0xff] %v2023_v33  ;;  %812 = vmax.xlane.f32.xlu0 %v811_v17  ;;  %v814_v26 = vmax.f32 %v2020_v1, %v2023_v33  ;;  %v244_v17 = vld [vmem:[%s2232_s2 + $0x40] sm:$0xff]  ;;  %v2040_v33 = vpop.f32.mrb[12].mxu0 }
 0x25a   : > { %2272 = vst [vmem:[#allocation24_spill] sm:$0xff] %v2040_v33 }
 0x25b   : > { %v718_v29 = vpop.f32.mrb[60].mxu1  ;;  %815 = vmax.xlane.f32.xlu1 %v814_v26  ;;  %v2042_v26 = vpop.f32.mrb[13].mxu0 }
 0x25c   : > { %v2030_v6 = vadd.f32 %v718_v29, %v1784_v10  ;;  %v720_v63 = vpop.f32.mrb[61].mxu1  ;;  %2273 = vst [vmem:[#allocation25_spill] sm:$0xff] %v2042_v26  ;;  %v2044_v29 = vpop.f32.mrb[14].mxu0 }
 0x25d   : > { %v2033_v57 = vadd.f32 %v720_v63, %v1787_v11  ;;  %v722_v61 = vpop.f32.mrb[62].mxu1  ;;  %2274 = vst [vmem:[#allocation26_spill] sm:$0xff] %v2044_v29  ;;  %v2046_v1 = vpop.f32.mrb[15].mxu0 }
 0x25e   : > { %2270 = vst [vmem:[#allocation22_spill] sm:$0xff] %v2030_v6  ;;  %v724_v53 = vpop.f32.mrb[63].mxu1  ;;  %2275 = vst [vmem:[#allocation27_spill] sm:$0xff] %v2046_v1  ;;  %v2048_v63 = vpop.f32.mrb[16].mxu0 }
 0x25f   : > { %2271 = vst [vmem:[#allocation23_spill] sm:$0xff] %v2033_v57  ;;  %v817_v40 = vmax.f32 %v2030_v6, %v2033_v57  ;;  %2276 = vst [vmem:[#allocation28_spill] sm:$0xff] %v2048_v63  ;;  %v2050_v45 = vpop.f32.mrb[17].mxu0 }
 0x260   : > { %2277 = vst [vmem:[#allocation29_spill] sm:$0xff] %v2050_v45 }
 0x261   : > { %818 = vmax.xlane.f32.xlu0 %v817_v40  ;;  %v243_v40 = vld [vmem:[%s2232_s2 + $0x38] sm:$0xff] }
 0x26c   : > { %288 = vperm.xlu1 %1375, %v244_v17   ;;  %v241_v17 = vld [vmem:[%s2232_s2 + $0x28] sm:$0xff] }
 0x276   : > { %v729_v57 = vpop.xlane.xlu1 %728 }
 0x277   : > { %v823_v6 = vsub.f32 %v1790_v12, %v729_v57  ;;  %v824_v33 = vsub.f32 %v1793_v14, %v729_v57  ;;  %283 = vperm.xlu0 %1374, %v243_v40  }
 0x278   : > { %v732_v26 = vpop.xlane.xlu0 %731 }
 0x279   : > { %v887_v1 = vmul.f32 1.442695, %v823_v6  ;;  %v889_v29 = vmul.f32 1.442695, %v824_v33  ;;  %v825_v63 = vsub.f32 %v1796_v16, %v732_v26  ;;  %v826_v45 = vsub.f32 %v1799_v18, %v732_v26 }
 0x27b   : > { %1381 = vpow2.f32 %v887_v1  ;;  %v891_v8 = vmul.f32 1.442695, %v825_v63  ;;  %v893_v50 = vmul.f32 1.442695, %v826_v45  ;;  %273 = vperm.xlu0 %1374, %v241_v17  }
 0x27c   : > { %1383 = vpow2.f32 %v889_v29 }
 0x27d   : > { %1385 = vpow2.f32 %v891_v8 }
 0x27e   : > { %1387 = vpow2.f32 %v893_v50  ;;  %v735_v12 = vpop.xlane.xlu1 %734 }
 0x27f   : > { %v827_v14 = vsub.f32 %v1806_v22, %v735_v12  ;;  %v828_v57 = vsub.f32 %v1809_v24, %v735_v12  ;;  %v2072_v12 = vadd.f32 %v724_v53, %v1787_v11 }
 0x281   : > { %v895_v40 = vmul.f32 1.442695, %v827_v14  ;;  %v897_v23 = vmul.f32 1.442695, %v828_v57 }
 0x282   : > { %v738_v6 = vpop.xlane.xlu1 %737 }
 0x283   : > { %v829_v33 = vsub.f32 %v1812_v27, %v738_v6  ;;  %v830_v16 = vsub.f32 %v1815_v28, %v738_v6  ;;  %1389 = vpow2.f32 %v895_v40  ;;  %v2069_v28 = vadd.f32 %v722_v61, %v1784_v10 }
 0x284   : > { %1391 = vpow2.f32 %v897_v23 }
 0x285   : > { %v1382_v18 = vpop.eup %1381  ;;  %v899_v1 = vmul.f32 1.442695, %v829_v33  ;;  %v901_v45 = vmul.f32 1.442695, %v830_v16  ;;  %v820_v10 = vmax.f32 %v2069_v28, %v2072_v12 }
 0x286   : > { %v1384_v26 = vpop.eup %1383  ;;  %v741_v8 = vpop.xlane.xlu1 %740 }
 0x287   : > { %v1386_v50 = vpop.eup %1385  ;;  %1393 = vpow2.f32 %v899_v1  ;;  %v831_v22 = vsub.f32 %v1822_v32, %v741_v8  ;;  %v832_v24 = vsub.f32 %v1825_v34, %v741_v8 }
 0x288   : > { %v1388_v29 = vpop.eup %1387  ;;  %1395 = vpow2.f32 %v901_v45  ;;  %v1015_v63 = vpack.c.bf16 %v1386_v50, %v1382_v18 }
 0x289   : > { %v903_v17 = vmul.f32 1.442695, %v831_v22  ;;  %v1016_v27 = vpack.c.bf16 %v1388_v29, %v1384_v26  ;;  %v905_v14 = vmul.f32 1.442695, %v832_v24 }
 0x28a   : > { %v744_v23 = vpop.xlane.xlu1 %743 }
 0x28b   : > { %1047 = vmatprep.subr.bf16.mxu0 %v1016_v27  ;;  %1284 = vmatprep.subr.bf16.mxu1 %v1016_v27  ;;  %v833_v57 = vsub.f32 %v1828_v37, %v744_v23  ;;  %v834_v32 = vsub.f32 %v1831_v38, %v744_v23  ;;  %1397 = vpow2.f32 %v903_v17 }
 0x28c   : > { %1048 = vmatpush1.bf16.xpose.msra.mxu0 %v1015_v63  ;;  %1300 = vmatpush1.bf16.xpose.msra.mxu1 %v1015_v63  ;;  %1399 = vpow2.f32 %v905_v14 }
 0x28d   : > { %v907_v34 = vmul.f32 1.442695, %v833_v57  ;;  %v909_v40 = vmul.f32 1.442695, %v834_v32  ;;  %v1390_v11 = vpop.eup %1389 }
 0x28e   : > { %v747_v6 = vpop.xlane.xlu1 %746  ;;  %v1392_v33 = vpop.eup %1391 }
 0x28f   : > { %1401 = vpow2.f32 %v907_v34  ;;  %v835_v53 = vsub.f32 %v1838_v42, %v747_v6  ;;  %v836_v61 = vsub.f32 %v1841_v44, %v747_v6 }
 0x290   : > { %1403 = vpow2.f32 %v909_v40  ;;  %821 = vmax.xlane.f32.xlu1 %v820_v10 }
 0x291   : > { %v1394_v37 = vpop.eup %1393  ;;  %v911_v38 = vmul.f32 1.442695, %v835_v53  ;;  %v913_v18 = vmul.f32 1.442695, %v836_v61 }
 0x292   : > { %v1396_v16 = vpop.eup %1395  ;;  %v750_v1 = vpop.xlane.xlu1 %749  ;;  %v1017_v45 = vpack.c.bf16 %v1394_v37, %v1390_v11 }
 0x293   : > { %v837_v26 = vsub.f32 %v1844_v47, %v750_v1  ;;  %v838_v8 = vsub.f32 %v1847_v48, %v750_v1  ;;  %v1018_v50 = vpack.c.bf16 %v1396_v16, %v1392_v33  ;;  %1405 = vpow2.f32 %v911_v38 }
 0x294   : > { %1407 = vpow2.f32 %v913_v18 }
 0x295   : > { %v915_v22 = vmul.f32 1.442695, %v837_v26  ;;  %v917_v24 = vmul.f32 1.442695, %v838_v8  ;;  %1049 = vmatprep.subr.bf16.mxu0 %v1018_v50  ;;  %1285 = vmatprep.subr.bf16.mxu1 %v1018_v50  ;;  %v1398_v44 = vpop.eup %1397 }
 0x296   : > { %1050 = vmatpush1.bf16.xpose.msra.mxu0 %v1017_v45  ;;  %1301 = vmatpush1.bf16.xpose.msra.mxu1 %v1017_v45  ;;  %v753_v42 = vpop.xlane.xlu0 %752  ;;  %v1400_v63 = vpop.eup %1399 }
 0x297   : > { %1409 = vpow2.f32 %v915_v22  ;;  %v840_v29 = vsub.f32 %v1857_v54, %v753_v42  ;;  %v839_v48 = vsub.f32 %v1854_v52, %v753_v42  ;;  %v245_v52 = vld [vmem:[%s2232_s2 + $0x48] sm:$0xff]  ;;  %v2093_v45 = vpop.f32.mrb[18].mxu0 }
 0x298   : > { %1411 = vpow2.f32 %v917_v24  ;;  %v756_v17 = vpop.xlane.xlu1 %755 }
 0x299   : > { %v1402_v47 = vpop.eup %1401  ;;  %v921_v27 = vmul.f32 1.442695, %v840_v29  ;;  %v841_v14 = vsub.f32 %v1860_v56, %v756_v17  ;;  %v842_v23 = vsub.f32 %v1863_v58, %v756_v17  ;;  %v919_v10 = vmul.f32 1.442695, %v839_v48 }
 0x29a   : > { %v1404_v57 = vpop.eup %1403  ;;  %v1019_v32 = vpack.c.bf16 %v1402_v47, %v1398_v44 }
 0x29b   : > { %v923_v34 = vmul.f32 1.442695, %v841_v14  ;;  %v925_v40 = vmul.f32 1.442695, %v842_v23  ;;  %v1020_v6 = vpack.c.bf16 %v1404_v57, %v1400_v63  ;;  %1413 = vpow2.f32 %v921_v27 }
 0x29d   : > { %1051 = vmatprep.subr.bf16.mxu0 %v1020_v6  ;;  %1286 = vmatprep.subr.bf16.mxu1 %v1020_v6  ;;  %1415 = vpow2.f32 %v925_v40  ;;  %v1406_v56 = vpop.eup %1405 }
 0x29e   : > { %1052 = vmatpush1.bf16.xpose.msra.mxu0 %v1019_v32  ;;  %1302 = vmatpush1.bf16.xpose.msra.mxu1 %v1019_v32  ;;  %v759_v54 = vpop.xlane.xlu0 %758  ;;  %1417 = vpow2.f32 %v923_v34  ;;  %v1408_v11 = vpop.eup %1407 }
 0x29f   : > { %v844_v58 = vsub.f32 %v1873_v3, %v759_v54  ;;  %v843_v53 = vsub.f32 %v1870_v62, %v759_v54  ;;  %1419 = vpow2.f32 %v919_v10  ;;  %v242_v62 = vld [vmem:[%s2232_s2 + $0x30] sm:$0xff]  ;;  %v2098_v3 = vpop.f32.mrb[19].mxu0 }
 0x2a0   : > { %v762_v61 = vpop.xlane.xlu1 %761 }
 0x2a1   : > { %v1410_v33 = vpop.eup %1409  ;;  %v929_v37 = vmul.f32 1.442695, %v844_v58  ;;  %v845_v38 = vsub.f32 %v1876_v5, %v762_v61  ;;  %v846_v16 = vsub.f32 %v1879_v7, %v762_v61  ;;  %293 = vperm.xlu1 %1375, %v245_v52   ;;  %v927_v22 = vmul.f32 1.442695, %v843_v53 }
 0x2a2   : > { %v1412_v18 = vpop.eup %1411  ;;  %v1021_v1 = vpack.c.bf16 %v1410_v33, %v1406_v56 }
 0x2a3   : > { %v931_v26 = vmul.f32 1.442695, %v845_v38  ;;  %v933_v8 = vmul.f32 1.442695, %v846_v16  ;;  %v1022_v50 = vpack.c.bf16 %v1412_v18, %v1408_v11  ;;  %1421 = vpow2.f32 %v929_v37 }
 0x2a5   : > { %1053 = vmatprep.subr.bf16.mxu0 %v1022_v50  ;;  %1287 = vmatprep.subr.bf16.mxu1 %v1022_v50  ;;  %1423 = vpow2.f32 %v933_v8  ;;  %v1414_v7 = vpop.eup %1413 }
 0x2a6   : > { %278 = vperm.xlu1 %1375, %v242_v62   ;;  %1054 = vmatpush1.bf16.xpose.msra.mxu0 %v1021_v1  ;;  %v765_v5 = vpop.xlane.xlu0 %764  ;;  %1425 = vpow2.f32 %v931_v26 }
 0x2a7   : > { %1303 = vmatpush1.bf16.xpose.msra.mxu1 %v1021_v1  ;;  %v848_v24 = vsub.f32 %v1889_v19, %v765_v5  ;;  %v1416_v42 = vpop.eup %1415  ;;  %1427 = vpow2.f32 %v927_v22  ;;  %v847_v63 = vsub.f32 %v1886_v15, %v765_v5 }
 0x2a8   : > { %v768_v44 = vpop.xlane.xlu1 %767  ;;  %v1418_v29 = vpop.eup %1417  ;;  %v1024_v27 = vpack.c.bf16 %v1416_v42, %v1414_v7 }
 0x2a9   : > { %v937_v17 = vmul.f32 1.442695, %v848_v24  ;;  %v849_v47 = vsub.f32 %v1892_v21, %v768_v44  ;;  %v850_v48 = vsub.f32 %v1895_v25, %v768_v44  ;;  %v1420_v14 = vpop.eup %1419  ;;  %v935_v34 = vmul.f32 1.442695, %v847_v63 }
 0x2aa   : > { %1055 = vmatprep.subr.bf16.mxu0 %v1024_v27  ;;  %1288 = vmatprep.subr.bf16.mxu1 %v1024_v27  ;;  %v1023_v32 = vpack.c.bf16 %v1418_v29, %v1420_v14 }
 0x2ab   : > { %v939_v23 = vmul.f32 1.442695, %v849_v47  ;;  %v941_v57 = vmul.f32 1.442695, %v850_v48  ;;  %1429 = vpow2.f32 %v937_v17 }
 0x2ad   : > { %1431 = vpow2.f32 %v941_v57  ;;  %v1422_v40 = vpop.eup %1421 }
 0x2ae   : > { %1056 = vmatpush1.bf16.xpose.msra.mxu0 %v1023_v32  ;;  %v771_v19 = vpop.xlane.xlu0 %770  ;;  %1433 = vpow2.f32 %v939_v23 }
 0x2af   : > { %1304 = vmatpush1.bf16.xpose.msra.mxu1 %v1023_v32  ;;  %v852_v15 = vsub.f32 %v1905_v35, %v771_v19  ;;  %v1424_v21 = vpop.eup %1423  ;;  %v851_v25 = vsub.f32 %v1902_v31, %v771_v19  ;;  %1435 = vpow2.f32 %v935_v34 }
 0x2b0   : > { %v774_v6 = vpop.xlane.xlu1 %773  ;;  %v1426_v10 = vpop.eup %1425  ;;  %v1026_v11 = vpack.c.bf16 %v1424_v21, %v1422_v40 }
 0x2b1   : > { %v945_v54 = vmul.f32 1.442695, %v852_v15  ;;  %v853_v52 = vsub.f32 %v1908_v39, %v774_v6  ;;  %v854_v56 = vsub.f32 %v1911_v41, %v774_v6  ;;  %v1428_v58 = vpop.eup %1427  ;;  %v943_v33 = vmul.f32 1.442695, %v851_v25 }
 0x2b2   : > { %1057 = vmatprep.subr.bf16.mxu0 %v1026_v11  ;;  %1289 = vmatprep.subr.bf16.mxu1 %v1026_v11  ;;  %v1025_v37 = vpack.c.bf16 %v1426_v10, %v1428_v58 }
 0x2b3   : > { %v947_v53 = vmul.f32 1.442695, %v853_v52  ;;  %v949_v61 = vmul.f32 1.442695, %v854_v56  ;;  %1437 = vpow2.f32 %v945_v54 }
 0x2b5   : > { %1439 = vpow2.f32 %v949_v61  ;;  %v1430_v35 = vpop.eup %1429 }
 0x2b6   : > { %1058 = vmatpush1.bf16.xpose.msra.mxu0 %v1025_v37  ;;  %v777_v31 = vpop.xlane.xlu0 %776  ;;  %1441 = vpow2.f32 %v947_v53 }
 0x2b7   : > { %1305 = vmatpush1.bf16.xpose.msra.mxu1 %v1025_v37  ;;  %v856_v38 = vsub.f32 %v1921_v51, %v777_v31  ;;  %v1432_v39 = vpop.eup %1431  ;;  %1443 = vpow2.f32 %v943_v33  ;;  %v855_v18 = vsub.f32 %v1918_v49, %v777_v31  ;;  %v2278_v31 = vld [vmem:[#allocation9_spill] sm:$0xff] }
 0x2b8   : > { %v780_v41 = vpop.xlane.xlu1 %779  ;;  %v1434_v16 = vpop.eup %1433  ;;  %v1028_v50 = vpack.c.bf16 %v1432_v39, %v1430_v35 }
 0x2b9   : > { %v953_v1 = vmul.f32 1.442695, %v856_v38  ;;  %v857_v26 = vsub.f32 %v1924_v55, %v780_v41  ;;  %v858_v8 = vsub.f32 %v1927_v59, %v780_v41  ;;  %v1436_v62 = vpop.eup %1435  ;;  %v951_v24 = vmul.f32 1.442695, %v855_v18 }
 0x2ba   : > { %1059 = vmatprep.subr.bf16.mxu0 %v1028_v50  ;;  %1290 = vmatprep.subr.bf16.mxu1 %v1028_v50  ;;  %v1027_v7 = vpack.c.bf16 %v1434_v16, %v1436_v62 }
 0x2bb   : > { %v955_v22 = vmul.f32 1.442695, %v857_v26  ;;  %v957_v5 = vmul.f32 1.442695, %v858_v8  ;;  %1445 = vpow2.f32 %v953_v1  ;;  %v2279_v26 = vld [vmem:[#allocation11_spill] sm:$0xff] }
 0x2bd   : > { %1447 = vpow2.f32 %v957_v5  ;;  %v1438_v42 = vpop.eup %1437 }
 0x2be   : > { %1060 = vmatpush1.bf16.xpose.msra.mxu0 %v1027_v7  ;;  %v783_v51 = vpop.xlane.xlu0 %782  ;;  %1449 = vpow2.f32 %v955_v22  ;;  %v2280_v22 = vld [vmem:[#allocation10_spill] sm:$0xff] }
 0x2bf   : > { %1306 = vmatpush1.bf16.xpose.msra.mxu1 %v1027_v7  ;;  %v860_v49 = vsub.f32 %v1937_v9, %v783_v51  ;;  %v1440_v55 = vpop.eup %1439  ;;  %v859_v59 = vsub.f32 %v1934_v4, %v783_v51  ;;  %1451 = vpow2.f32 %v951_v24  ;;  %v2281_v24 = vld [vmem:[#allocation12_spill] sm:$0xff] }
 0x2c0   : > { %v786_v44 = vpop.xlane.xlu1 %785  ;;  %v1442_v29 = vpop.eup %1441  ;;  %v1030_v27 = vpack.c.bf16 %v1440_v55, %v1438_v42  ;;  %v2282_v42 = vld [vmem:[#allocation13_spill] sm:$0xff] }
 0x2c1   : > { %v961_v63 = vmul.f32 1.442695, %v860_v49  ;;  %v861_v17 = vsub.f32 %v1940_v13, %v786_v44  ;;  %v862_v47 = vsub.f32 %v1943_v20, %v786_v44  ;;  %v1444_v48 = vpop.eup %1443  ;;  %v959_v57 = vmul.f32 1.442695, %v859_v59 }
 0x2c2   : > { %1061 = vmatprep.subr.bf16.mxu0 %v1030_v27  ;;  %1291 = vmatprep.subr.bf16.mxu1 %v1030_v27  ;;  %v1029_v32 = vpack.c.bf16 %v1442_v29, %v1444_v48  ;;  %v2283_v27 = vld [vmem:[#allocation15_spill] sm:$0xff] }
 0x2c3   : > { %v963_v14 = vmul.f32 1.442695, %v861_v17  ;;  %v965_v23 = vmul.f32 1.442695, %v862_v47  ;;  %1453 = vpow2.f32 %v961_v63 }
 0x2c5   : > { %1455 = vpow2.f32 %v965_v23  ;;  %v1446_v9 = vpop.eup %1445 }
 0x2c6   : > { %1062 = vmatpush1.bf16.xpose.msra.mxu0 %v1029_v32  ;;  %v789_v4 = vpop.xlane.xlu0 %788  ;;  %1457 = vpow2.f32 %v963_v14 }
 0x2c7   : > { %1307 = vmatpush1.bf16.xpose.msra.mxu1 %v1029_v32  ;;  %v864_v34 = vsub.f32 %v1953_v36, %v789_v4  ;;  %v1448_v13 = vpop.eup %1447  ;;  %1459 = vpow2.f32 %v959_v57  ;;  %v863_v40 = vsub.f32 %v1950_v30, %v789_v4  ;;  %v2284_v57 = vld [vmem:[#allocation14_spill] sm:$0xff] }
 0x2c8   : > { %v792_v20 = vpop.xlane.xlu1 %791  ;;  %v1450_v19 = vpop.eup %1449  ;;  %v1032_v6 = vpack.c.bf16 %v1448_v13, %v1446_v9  ;;  %v2285_v13 = vld [vmem:[#allocation16_spill] sm:$0xff] }
 0x2c9   : > { %v969_v15 = vmul.f32 1.442695, %v864_v34  ;;  %v865_v21 = vsub.f32 %v1956_v43, %v792_v20  ;;  %v866_v25 = vsub.f32 %v1959_v46, %v792_v20  ;;  %v1452_v10 = vpop.eup %1451  ;;  %v967_v58 = vmul.f32 1.442695, %v863_v40 }
 0x2ca   : > { %1063 = vmatprep.subr.bf16.mxu0 %v1032_v6  ;;  %1292 = vmatprep.subr.bf16.mxu1 %v1032_v6  ;;  %v1031_v56 = vpack.c.bf16 %v1450_v19, %v1452_v10  ;;  %v2286_v19 = vld [vmem:[#allocation17_spill] sm:$0xff] }
 0x2cb   : > { %v971_v54 = vmul.f32 1.442695, %v865_v21  ;;  %v973_v52 = vmul.f32 1.442695, %v866_v25  ;;  %1461 = vpow2.f32 %v969_v15 }
 0x2cd   : > { %1463 = vpow2.f32 %v973_v52  ;;  %v1454_v11 = vpop.eup %1453 }
 0x2ce   : > { %1064 = vmatpush1.bf16.xpose.msra.mxu0 %v1031_v56  ;;  %v795_v36 = vpop.xlane.xlu0 %794  ;;  %1465 = vpow2.f32 %v971_v54 }
 0x2cf   : > { %1308 = vmatpush1.bf16.xpose.msra.mxu1 %v1031_v56  ;;  %v868_v30 = vsub.f32 %v1969_v2, %v795_v36  ;;  %v1456_v43 = vpop.eup %1455  ;;  %v867_v46 = vsub.f32 %v1966_v60, %v795_v36  ;;  %1467 = vpow2.f32 %v967_v58  ;;  %v2287_v58 = vld [vmem:[#allocation19_spill] sm:$0xff] }
 0x2d0   : > { %v798_v53 = vpop.xlane.xlu1 %797  ;;  %v1458_v61 = vpop.eup %1457  ;;  %v1034_v39 = vpack.c.bf16 %v1456_v43, %v1454_v11 }
 0x2d1   : > { %v977_v33 = vmul.f32 1.442695, %v868_v30  ;;  %v869_v37 = vsub.f32 %v1972_v0, %v798_v53  ;;  %v870_v35 = vsub.f32 %v2278_v31, %v798_v53  ;;  %v1460_v38 = vpop.eup %1459  ;;  %v975_v18 = vmul.f32 1.442695, %v867_v46  ;;  %v2288_v46 = vld [vmem:[#allocation18_spill] sm:$0xff]  ;;  %v2290_v31 = vld [vmem:[#allocation21_spill] sm:$0xff] }
 0x2d2   : > { %1065 = vmatprep.subr.bf16.mxu0 %v1034_v39  ;;  %1293 = vmatprep.subr.bf16.mxu1 %v1034_v39  ;;  %v1033_v1 = vpack.c.bf16 %v1458_v61, %v1460_v38 }
 0x2d3   : > { %v979_v41 = vmul.f32 1.442695, %v869_v37  ;;  %v981_v16 = vmul.f32 1.442695, %v870_v35  ;;  %1469 = vpow2.f32 %v977_v33  ;;  %v2289_v33 = vld [vmem:[#allocation20_spill] sm:$0xff] }
 0x2d5   : > { %1471 = vpow2.f32 %v981_v16  ;;  %v1462_v2 = vpop.eup %1461 }
 0x2d6   : > { %1066 = vmatpush1.bf16.xpose.msra.mxu0 %v1033_v1  ;;  %v801_v60 = vpop.xlane.xlu0 %800  ;;  %1473 = vpow2.f32 %v979_v41 }
 0x2d7   : > { %1309 = vmatpush1.bf16.xpose.msra.mxu1 %v1033_v1  ;;  %v872_v8 = vsub.f32 %v2279_v26, %v801_v60  ;;  %v1464_v0 = vpop.eup %1463  ;;  %1475 = vpow2.f32 %v975_v18  ;;  %v871_v5 = vsub.f32 %v2280_v22, %v801_v60 }
 0x2d8   : > { %v804_v50 = vpop.xlane.xlu1 %803  ;;  %v1466_v62 = vpop.eup %1465  ;;  %v1036_v55 = vpack.c.bf16 %v1464_v0, %v1462_v2 }
 0x2d9   : > { %v985_v7 = vmul.f32 1.442695, %v872_v8  ;;  %v873_v51 = vsub.f32 %v2281_v24, %v804_v50  ;;  %v874_v49 = vsub.f32 %v2282_v42, %v804_v50  ;;  %v1468_v59 = vpop.eup %1467  ;;  %v983_v17 = vmul.f32 1.442695, %v871_v5  ;;  %v2291_v24 = vld [vmem:[#allocation28_spill] sm:$0xff]  ;;  %v2292_v42 = vld [vmem:[#allocation29_spill] sm:$0xff] }
 0x2da   : > { %1067 = vmatprep.subr.bf16.mxu0 %v1036_v55  ;;  %1294 = vmatprep.subr.bf16.mxu1 %v1036_v55  ;;  %v1035_v63 = vpack.c.bf16 %v1466_v62, %v1468_v59  ;;  %v2293_v55 = vld [vmem:[#allocation26_spill] sm:$0xff] }
 0x2db   : > { %v987_v44 = vmul.f32 1.442695, %v873_v51  ;;  %v989_v29 = vmul.f32 1.442695, %v874_v49  ;;  %1477 = vpow2.f32 %v985_v7 }
 0x2dd   : > { %1479 = vpow2.f32 %v989_v29  ;;  %v1470_v48 = vpop.eup %1469 }
 0x2de   : > { %1068 = vmatpush1.bf16.xpose.msra.mxu0 %v1035_v63  ;;  %v807_v47 = vpop.xlane.xlu0 %806  ;;  %1481 = vpow2.f32 %v987_v44  ;;  %v2294_v44 = vld [vmem:[#allocation27_spill] sm:$0xff] }
 0x2df   : > { %1310 = vmatpush1.bf16.xpose.msra.mxu1 %v1035_v63  ;;  %v876_v14 = vsub.f32 %v2283_v27, %v807_v47  ;;  %v1472_v23 = vpop.eup %1471  ;;  %v875_v32 = vsub.f32 %v2284_v57, %v807_v47  ;;  %1483 = vpow2.f32 %v983_v17  ;;  %v2295_v57 = vld [vmem:[#allocation22_spill] sm:$0xff] }
 0x2e0   : > { %v810_v4 = vpop.xlane.xlu1 %809  ;;  %v1474_v9 = vpop.eup %1473  ;;  %v1038_v21 = vpack.c.bf16 %v1472_v23, %v1470_v48 }
 0x2e1   : > { %v993_v34 = vmul.f32 1.442695, %v876_v14  ;;  %v877_v20 = vsub.f32 %v2285_v13, %v810_v4  ;;  %v878_v40 = vsub.f32 %v2286_v19, %v810_v4  ;;  %v1476_v15 = vpop.eup %1475  ;;  %v991_v10 = vmul.f32 1.442695, %v875_v32  ;;  %v2296_v4 = vld [vmem:[#allocation23_spill] sm:$0xff] }
 0x2e2   : > { %1069 = vmatprep.subr.bf16.mxu0 %v1038_v21  ;;  %1295 = vmatprep.subr.bf16.mxu1 %v1038_v21  ;;  %v1037_v54 = vpack.c.bf16 %v1474_v9, %v1476_v15 }
 0x2e3   : > { %v995_v25 = vmul.f32 1.442695, %v877_v20  ;;  %v997_v6 = vmul.f32 1.442695, %v878_v40  ;;  %1485 = vpow2.f32 %v993_v34 }
 0x2e5   : > { %1487 = vpow2.f32 %v997_v6  ;;  %v1478_v56 = vpop.eup %1477 }
 0x2e6   : > { %1070 = vmatpush1.bf16.xpose.msra.mxu0 %v1037_v54  ;;  %v813_v52 = vpop.xlane.xlu0 %812  ;;  %1489 = vpow2.f32 %v995_v25 }
 0x2e7   : > { %1311 = vmatpush1.bf16.xpose.msra.mxu1 %v1037_v54  ;;  %v880_v36 = vsub.f32 %v2287_v58, %v813_v52  ;;  %v1480_v11 = vpop.eup %1479  ;;  %1491 = vpow2.f32 %v991_v10  ;;  %v879_v53 = vsub.f32 %v2288_v46, %v813_v52  ;;  %v2297_v54 = vld [vmem:[#allocation6_spill] sm:$0xff] }
 0x2e8   : > { %v816_v30 = vpop.xlane.xlu1 %815  ;;  %v1482_v43 = vpop.eup %1481  ;;  %v1040_v38 = vpack.c.bf16 %v1480_v11, %v1478_v56  ;;  %v2298_v56 = vld [vmem:[#allocation7_spill] sm:$0xff] }
 0x2e9   : > { %v1001_v61 = vmul.f32 1.442695, %v880_v36  ;;  %v881_v37 = vsub.f32 %v2289_v33, %v816_v30  ;;  %v882_v35 = vsub.f32 %v2290_v31, %v816_v30  ;;  %v1484_v39 = vpop.eup %1483  ;;  %v999_v1 = vmul.f32 1.442695, %v879_v53  ;;  %v2299_v36 = vld [vmem:[#allocation24_spill] sm:$0xff]  ;;  %v2300_v30 = vld [vmem:[#allocation25_spill] sm:$0xff] }
 0x2ea   : > { %1071 = vmatprep.subr.bf16.mxu0 %v1040_v38  ;;  %1296 = vmatprep.subr.bf16.mxu1 %v1040_v38  ;;  %v1039_v18 = vpack.c.bf16 %v1482_v43, %v1484_v39 }
 0x2eb   : > { %v1003_v41 = vmul.f32 1.442695, %v881_v37  ;;  %v1005_v16 = vmul.f32 1.442695, %v882_v35  ;;  %1493 = vpow2.f32 %v1001_v61 }
 0x2ec   : > { %v289_v62 = vpop.permute.xlu1 %288 }
 0x2ed   : > { %1495 = vpow2.f32 %v1005_v16  ;;  %v1486_v60 = vpop.eup %1485  ;;  %v412_v51 = vadd.f32 %v2291_v24, %v289_v62  ;;  %v414_v49 = vadd.f32 %v2292_v42, %v289_v62 }
 0x2ee   : > { %1072 = vmatpush1.bf16.xpose.msra.mxu0 %v1039_v18  ;;  %1497 = vpow2.f32 %v1003_v41  ;;  %v819_v50 = vpop.xlane.xlu0 %818 }
 0x2ef   : > { %1312 = vmatpush1.bf16.xpose.msra.mxu1 %v1039_v18  ;;  %v1488_v2 = vpop.eup %1487  ;;  %1499 = vpow2.f32 %v999_v1  ;;  %v883_v32 = vsub.f32 %v2295_v57, %v819_v50  ;;  %v884_v9 = vsub.f32 %v2296_v4, %v819_v50 }
 0x2f0   : > { %v1490_v26 = vpop.eup %1489  ;;  %v1042_v8 = vpack.c.bf16 %v1488_v2, %v1486_v60 }
 0x2f1   : > { %v1492_v0 = vpop.eup %1491  ;;  %v1007_v34 = vmul.f32 1.442695, %v883_v32  ;;  %v1009_v13 = vmul.f32 1.442695, %v884_v9 }
 0x2f2   : > { %1073 = vmatprep.subr.bf16.mxu0 %v1042_v8  ;;  %1297 = vmatprep.subr.bf16.mxu1 %v1042_v8  ;;  %v1041_v22 = vpack.c.bf16 %v1490_v26, %v1492_v0 }
 0x2f3   : > { %1501 = vpow2.f32 %v1007_v34  ;;  %v1513_v34 = vld [vmem:[%s1709_s16] sm:$0xff] }
 0x2f4   : > { %1503 = vpow2.f32 %v1009_v13 }
 0x2f5   : > { %v1494_v7 = vpop.eup %1493 }
 0x2f6   : > { %1074 = vmatpush1.bf16.xpose.msra.mxu0 %v1041_v22  ;;  %v284_v5 = vpop.permute.xlu0 %283 }
 0x2f7   : > { %1313 = vmatpush1.bf16.xpose.msra.mxu1 %v1041_v22  ;;  %v406_v59 = vadd.f32 %v2293_v55, %v284_v5  ;;  %v408_v29 = vadd.f32 %v2294_v44, %v284_v5  ;;  %v1496_v63 = vpop.eup %1495 }
 0x2f8   : > { %v1498_v17 = vpop.eup %1497  ;;  %v1044_v27 = vpack.c.bf16 %v1496_v63, %v1494_v7  ;;  %v2301_v7 = vld [vmem:[#allocation8_spill] sm:$0xff] }
 0x2f9   : > { %v426_v47 = vpack.c.bf16 %v412_v51, %v406_v59  ;;  %v427_v48 = vpack.c.bf16 %v414_v49, %v408_v29  ;;  %v1500_v14 = vpop.eup %1499  ;;  %v1127_v51 = vstv %s1126_s6 }
 0x2fa   : > { %1075 = vmatprep.subr.bf16.mxu0 %v1044_v27  ;;  %1298 = vmatprep.subr.bf16.mxu1 %v1044_v27  ;;  %v1043_v23 = vpack.c.bf16 %v1498_v17, %v1500_v14  ;;  %v274_v6 = vpop.permute.xlu0 %273 }
 0x2fb   : > { %1089 = vmatprep.mubr.bf16.mxu1 %v427_v48  ;;  %v396_v52 = vadd.f32 %v2297_v54, %v274_v6  ;;  %v398_v58 = vadd.f32 %v2298_v56, %v274_v6  ;;  %v1517_v6 = vld [vmem:[%s1709_s16 + $0x8] sm:$0xff]  ;;  %v1518_v54 = vld [vmem:[%s1709_s16 + $0x18] sm:$0xff] }
 0x2fc   : > { %v1519_v56 = vld [vmem:[%s1709_s16 + $0x28] sm:$0xff] }
 0x2fe   : > { %1076 = vmatpush1.bf16.xpose.msra.mxu0 %v1043_v23 }
 0x2ff   : > { %1314 = vmatpush1.bf16.xpose.msra.mxu1 %v1043_v23 }
 0x31d   : > { %v822_v20 = vpop.xlane.xlu1 %821 }
 0x31e   : > { %v885_v19 = vsub.f32 %v2069_v28, %v822_v20  ;;  %v886_v40 = vsub.f32 %v2072_v12, %v822_v20  ;;  %v1502_v12 = vpop.eup %1501  ;;  %v1514_v20 = vld [vmem:[%s1709_s16 + $0x10] sm:$0xff] }
 0x31f   : > { %v1504_v53 = vpop.eup %1503 }
 0x320   : > { %v1011_v15 = vmul.f32 1.442695, %v885_v19  ;;  %v1013_v21 = vmul.f32 1.442695, %v886_v40  ;;  %v1515_v40 = vld [vmem:[%s1709_s16 + $0x20] sm:$0xff] }
 0x321   : > { %v294_v25 = vpop.permute.xlu1 %293 }
 0x322   : > { %1505 = vpow2.f32 %v1011_v15  ;;  %v418_v35 = vadd.f32 %v2098_v3, %v294_v25  ;;  %v416_v39 = vadd.f32 %v2093_v45, %v294_v25 }
 0x323   : > { %1507 = vpow2.f32 %v1013_v21  ;;  %v1516_v21 = vld [vmem:[%s1709_s16 + $0x30] sm:$0xff] }
 0x324   : > { %v429_v38 = vpack.c.bf16 %v418_v35, %v418_v35  ;;  %v428_v41 = vpack.c.bf16 %v416_v39, %v416_v39 }
 0x325   : > { %v279_v10 = vpop.permute.xlu1 %278 }
 0x326   : > { %v402_v11 = vadd.f32 %v2299_v36, %v279_v10  ;;  %v404_v43 = vadd.f32 %v2300_v30, %v279_v10  ;;  %v1520_v36 = vld [vmem:[%s1709_s16 + $0x38] sm:$0xff]  ;;  %s1525_s16 = sshll.u32 %s1602_s3, 4  ;;  %s1526_s16 = int_to_ptr.vmem [resolvable:$false] %s1525_s16 }
 0x327   : > { %s1527_s23 = scalar_lea.vmem %s1526_s16, 2048  ;;  %p1528_p1 = scmp.lt.s32.totalorder %s2168_s11, %s1526_s16 }
 0x328   : > { %v424_v28 = vpack.c.bf16 %v402_v11, %v396_v52  ;;  %v425_v46 = vpack.c.bf16 %v404_v43, %v398_v58  ;;  %p1529_p2 = scmp.lt.s32.totalorder %s1527_s23, %s1521_s15 }
 0x32a   : > { %1079 = vmatprep.mubr.bf16.mxu0 %v425_v46  ;;  %p1530_p3 = por %p1529_p2, %p1528_p1 }
 0x32c   : > { %v1506_v61 = vpop.eup %1505  ;;  %p1531_p5 = pnand %p1530_p3, %p1524_p0 }
 0x32d   : > { %v1508_v33 = vpop.eup %1507  ;;  %v1045_v37 = vpack.c.bf16 %v1506_v61, %v1502_v12 }
 0x32e   : > { %v1046_v31 = vpack.c.bf16 %v1508_v33, %v1504_v53 }
 0x330   : > { %1077 = vmatprep.subr.bf16.mxu0 %v1046_v31  ;;  %1299 = vmatprep.subr.bf16.mxu1 %v1046_v31 }
 0x331   : > { %1078 = vmatpush1.bf16.xpose.msra.mxu0 %v1045_v37  ;;  %1315 = vmatpush1.bf16.xpose.msra.mxu1 %v1045_v37 }
 0x338   : > { %1080 = vmatmul.mubr.bf16.vlgmr.msra.gmra.mrb[20].mxu0 %v424_v28  ;;  %1090 = vmatmul.mubr.bf16.vlgmr.msra.gmra.mrb[64].mxu1 %v426_v47 }
 0x339   : > { %1099 = vmatprep.mubr.bf16.mxu1 %v429_v38 }
 0x340   : > { %1100 = vmatmul.mubr.bf16.gmra.mrb[68].mxu1 %v428_v41 }
 0x40b   : > { %v1081_v16 = vpop.f32.mrb[20].mxu0  ;;  %v1091_v18 = vpop.f32.mrb[64].mxu1 }
 0x40c   : > { %v1083_v1 = vpop.f32.mrb[21].mxu0  ;;  %v1093_v60 = vpop.f32.mrb[65].mxu1 }
 0x40d   : > { %v1085_v2 = vpop.f32.mrb[22].mxu0  ;;  %v1095_v26 = vpop.f32.mrb[66].mxu1 }
 0x40e   : > { %v1087_v8 = vpop.f32.mrb[23].mxu0  ;;  %v1097_v0 = vpop.f32.mrb[67].mxu1 }
 0x413   : > { %v1101_v50 = vpop.f32.mrb[68].mxu1 }
 0x414   : > { %1509 = vrcp.f32 %v1101_v50  ;;  %v1103_v3 = vpop.f32.mrb[69].mxu1 }
 0x415   : > { %1511 = vrcp.f32 %v1103_v3  ;;  %v1105_v62 = vpop.f32.mrb[70].mxu1 }
 0x416   : > { %v1106_v22 = vpop.f32.mrb[71].mxu1 }
 0x41e   : > { %v1510_v45 = vpop.eup %1509 }
 0x41f   : > { %v1512_v5 = vpop.eup %1511  ;;  %v1113_v24 = vrot.slane %v1510_v45, %v2301_v7 }
 0x420   : > { %v1117_v42 = vrot.slane %v1512_v5, %v2301_v7 }
 0x421   : > { %v1118_v49 = vmul.f32 %v1113_v24, %v1081_v16  ;;  %v1120_v55 = vmul.f32 %v1113_v24, %v1085_v2  ;;  %v1122_v59 = vmul.f32 %v1113_v24, %v1091_v18  ;;  %v1124_v44 = vmul.f32 %v1113_v24, %v1095_v26 }
 0x422   : > { %v1119_v29 = vmul.f32 %v1117_v42, %v1083_v1  ;;  %v1121_v63 = vmul.f32 %v1117_v42, %v1087_v8  ;;  %v1123_v17 = vmul.f32 %v1117_v42, %v1093_v60  ;;  %v1125_v47 = vmul.f32 %v1117_v42, %v1097_v0 }
 0x423   : > { %v1128_v48 = vmul.f32 %v1127_v51, %v1118_v49  ;;  %v1130_v27 = vmul.f32 %v1127_v51, %v1120_v55  ;;  %v1132_v14 = vmul.f32 %v1127_v51, %v1122_v59  ;;  %v1134_v23 = vmul.f32 %v1127_v51, %v1124_v44 }
 0x424   : > { %v1129_v57 = vmul.f32 %v1127_v51, %v1119_v29  ;;  %v1131_v32 = vmul.f32 %v1127_v51, %v1121_v63  ;;  %v1133_v4 = vmul.f32 %v1127_v51, %v1123_v17  ;;  %v1135_v9 = vmul.f32 %v1127_v51, %v1125_v47 }
 0x425   : > { %v1136_v13 = vadd.f32 %v1513_v34, %v1128_v48  ;;  %v1138_v19 = vadd.f32 %v1514_v20, %v1130_v27  ;;  %v1140_v15 = vadd.f32 %v1515_v40, %v1132_v14  ;;  %v1142_v25 = vadd.f32 %v1516_v21, %v1134_v23 }
 0x426   : > { %v1137_v10 = vadd.f32 %v1517_v6, %v1129_v57  ;;  %v1139_v52 = vadd.f32 %v1518_v54, %v1131_v32  ;;  %v1141_v58 = vadd.f32 %v1519_v56, %v1133_v4  ;;  %v1143_v11 = vadd.f32 %v1520_v36, %v1135_v9 }
 0x427   : > { %1144 = vst [vmem:[%s2156_s10] sm:$0xff] %v1136_v13  ;;  %1146 = vst [vmem:[%s2156_s10 + $0x10] sm:$0xff] %v1138_v19 }
 0x428   : > { %1148 = vst [vmem:[%s2156_s10 + $0x20] sm:$0xff] %v1140_v15  ;;  %1150 = vst [vmem:[%s2156_s10 + $0x30] sm:$0xff] %v1142_v25 }
 0x429   : > { %1145 = vst [vmem:[%s2156_s10 + $0x8] sm:$0xff] %v1137_v10  ;;  %1147 = vst [vmem:[%s2156_s10 + $0x18] sm:$0xff] %v1139_v52 }
 0x42a   : > { %1149 = vst [vmem:[%s2156_s10 + $0x28] sm:$0xff] %v1141_v58  ;;  %1151 = vst [vmem:[%s2156_s10 + $0x38] sm:$0xff] %v1143_v11 }
 0x42b   : > { %1534 = shalt.err (!%p1531_p5)
}
 0x42c   : > { %s1535_s25 = scalar_lea.hbm %s2166_s13, 1024  ;;  %s1539_s5 = scalar_lea.hbm %s2234_s4, 2048 }
 0x42d   : > { %p1536_p6 = scmp.ne.s32.totalorder %s2166_s13, %s1535_s25  ;;  %p1540_p10 = scmp.lt.u32.totalorder %s2166_s13, %s2234_s4 }
 0x42e   : > { %p1541_p11 = scmp.lt.u32.totalorder %s1539_s5, %s1535_s25  ;;  %p1543_p13 = scmp.lt.u32.totalorder %s1535_s25, %s2166_s13 }
 0x42f   : > { %p1537_p7 = pnand %p1536_p6, %p1673_p4 }
 0x430   : > { %p1542_p12 = por %p1541_p11, %p1540_p10 }
 0x431   : > { %p1538_p9 = pneg %p1537_p7 }
 0x432   : > { %p1544_p0 = por %p1543_p13, %p1542_p12 }
 0x434   : > { %p1545_p1 = pnand %p1544_p0, %p1538_p9 }
 0x436   : > { %1548 = shalt.err (!%p1545_p1)
}
 0x437   : > { %s1603_s8 = smov 256   ;;  %s1604_s9 = smov 16  }
 0x438   : > { %1316 = dma.vmem_to_hbm [thread:$0]  (%p1673_p4), %s2168_s11, 1024, %s2166_s13, %s2184_s14, %s1603_s8, %s1603_s8, %s1604_s9  }
 0x439 PF: > { %p1322_p2 = scmp.ge.s32.totalorder %s1599_s22, 2  ;;  %s1183_s10 = sand.u32 1, %s1579_s17  }
 0x43a   : > { %s1184_s20 = scalar_lea.sflag [#allocation4], %s1183_s10 }
 0x43b   : > { %p1319_p3 = pnand %p1322_p2, %p1680_p8 }
 0x43d   : > { %1574 = dma.done.wait (!%p1319_p3), %s1184_s20, 1024  }
 0x43e   : > { %1576 = vsyncadd (!%p1319_p3), %s1184_s20, 4294966272  ;;  %s18_s22 = sadd.s32 1, %s1599_s22   ;;  %s2302_s17 = smov %s1583_s18 }
 0x43f   : > { %p15_p5 = scmp.ge.s32.totalorder %s18_s22, 4   ;;  %s2303_s18 = smov %s1587_s19 }
 0x440   : > { %s2304_s19 = smov %s1686_s29  ;;  %s2305_s20 = smov %s1595_s21 }
 0x441   : > { %s2306_s21 = smov %s2308_s24  ;;  %17 = sbr.rel (!%p15_p5) target bundleno = 6 (0x6), region = 72 }
 0x448   :  { %1189 = vsyncpa [#allocation4], 1 }
 0x449   :  { %1191 = vsyncpa [#allocation4 + $0x1], 1 }

</bundles_post_ra>
